<compile_context>
chip_gen: v7x
topology: tpu7x:2x2x1
jax: 0.10.0
libtpu: 0.0.40
codegen_flags: <defaults>
</compile_context>

<pallas_src>
import jax
import jax.numpy as jnp
from jax.experimental import pallas as pl
from jax.experimental.pallas import tpu as pltpu

_NEG_BIG = -1.0e30  # bias for padded logit lanes -> exp() underflows to exactly 0


def mlp_kernel(x_ref, w1_ref, wattT_ref, batt_ref, wemb_ref, bemb_ref,
               wmlp_ref, bmlp_ref, out_ref):
    TB, S, Din = x_ref.shape
    H = w1_ref.shape[1]

    # Flatten the batch tile so every matmul sees TB*S (=256) MXU rows.
    # (S is a multiple of the f32 sublane tile, so this reshape is a free view.)
    x = x_ref[...].reshape(TB * S, Din)

    # fc1: Dense (no bias) + ReLU.  bf16 MXU operands, f32 accumulation.
    h = jnp.dot(x.astype(jnp.bfloat16), w1_ref[...],
                preferred_element_type=jnp.float32)
    h = jnp.maximum(h, 0.0)                                           # (TB*S, H) f32

    # readout attention gate: VPU mul + XLU lane reduction (not an N=1 MXU matmul),
    # sigmoid on the EUP, all in f32.
    att_logits = jnp.sum(h * wattT_ref[...], axis=-1, keepdims=True) \
        + batt_ref[0, 0]                                              # (TB*S, 1)
    att = jax.nn.sigmoid(att_logits)

    # readout embedding: bf16 MXU operands, f32 accumulation + f32 bias.
    emb = jnp.dot(h.astype(jnp.bfloat16), wemb_ref[...],
                  preferred_element_type=jnp.float32) + bemb_ref[...]  # (TB*S, H)

    # graph summation (mask == 1 everywhere -> N = S, max-offset = 0), f32.
    g = (att * emb).reshape(TB, S, H)
    g_pool = jnp.sum(g, axis=1) / jnp.float32(S) + jnp.max(g, axis=1)  # (TB, H)

    # classification head on padded (lane-dense) output columns; bf16 MXU operands.
    logits = jnp.dot(g_pool.astype(jnp.bfloat16), wmlp_ref[...],
                     preferred_element_type=jnp.float32) + bmlp_ref[...]  # (TB, O_pad)

    # softmax over the class dimension (padded lanes have -1e30 bias -> exp == 0), f32.
    m = jnp.max(logits, axis=-1, keepdims=True)
    e = jnp.exp(logits - m)
    out_ref[...] = e / jnp.sum(e, axis=-1, keepdims=True)             # (TB, O_pad)


def mlp_forward(x, params, tb=32):
    B, S, Din = x.shape
    H = params["w1"].shape[1]
    O = params["wmlp"].shape[1]

    # Pad batch to a multiple of the batch tile (padded rows are independent and
    # simply sliced away; no cross-row pooling, so no masking needed).
    B_pad = pl.cdiv(B, tb) * tb
    if B_pad != B:
        x = jnp.pad(x, ((0, B_pad - B), (0, 0), (0, 0)))

    # Lane-dense classifier: pad output columns to a 128-lane boundary.
    O_pad = pl.cdiv(O, 128) * 128
    wmlp_p = jnp.pad(params["wmlp"], ((0, 0), (0, O_pad - O)))
    bmlp_p = jnp.pad(params["bmlp"], ((0, 0), (0, O_pad - O)),
                     constant_values=_NEG_BIG)

    # bf16 copies of the MXU weight operands (halves weight HBM/VMEM traffic).
    w1_bf   = params["w1"].astype(jnp.bfloat16)
    wemb_bf = params["wemb"].astype(jnp.bfloat16)
    wmlp_bf = wmlp_p.astype(jnp.bfloat16)

    # Attention weight as a (1, H) f32 row for the VPU reduction.
    wattT = params["watt"].reshape(1, H)

    grid = (B_pad // tb,)

    # Advisory cost estimate for XLA's scheduler.
    flops = (2 * B_pad * S * Din * H          # fc1
             + 2 * B_pad * S * H * H          # emb
             + 2 * B_pad * S * H              # attention reduction
             + 2 * B_pad * H * O_pad)         # head
    bytes_accessed = (x.size * 4
                      + w1_bf.size * 2 + wemb_bf.size * 2 + wmlp_bf.size * 2
                      + wattT.size * 4 + params["bemb"].size * 4 + bmlp_p.size * 4
                      + B_pad * O_pad * 4)
    transcendentals = B_pad * S + B_pad * O_pad   # sigmoid + softmax exp

    # Grid-invariant blocks: single-buffered (no refetch to hide).
    const_buf = pl.Buffered(1)

    out = pl.pallas_call(
        mlp_kernel,
        out_shape=jax.ShapeDtypeStruct((B_pad, O_pad), jnp.float32),
        grid=grid,
        in_specs=[
            pl.BlockSpec((tb, S, Din), lambda b: (b, 0, 0)),                  # x
            pl.BlockSpec((Din, H), lambda b: (0, 0),
                         pipeline_mode=const_buf),                           # W1 (bf16)
            pl.BlockSpec((1, H), lambda b: (0, 0),
                         pipeline_mode=const_buf),                           # Watt^T (f32)
            pl.BlockSpec(memory_space=pltpu.MemorySpace.SMEM),               # batt scalar
            pl.BlockSpec((H, H), lambda b: (0, 0),
                         pipeline_mode=const_buf),                           # Wemb (bf16)
            pl.BlockSpec((1, H), lambda b: (0, 0),
                         pipeline_mode=const_buf),                           # bemb (f32)
            pl.BlockSpec((H, O_pad), lambda b: (0, 0),
                         pipeline_mode=const_buf),                           # Wmlp (bf16, padded)
            pl.BlockSpec((1, O_pad), lambda b: (0, 0),
                         pipeline_mode=const_buf),                           # bmlp (f32, padded)
        ],
        out_specs=pl.BlockSpec((tb, O_pad), lambda b: (b, 0)),
        compiler_params=pltpu.CompilerParams(
            dimension_semantics=("parallel",),
            vmem_limit_bytes=48 * 1024 * 1024),
        cost_estimate=pl.CostEstimate(
            flops=flops,
            transcendentals=transcendentals,
            bytes_accessed=bytes_accessed),
    )(x, w1_bf, wattT, params["batt"], wemb_bf,
      params["bemb"], wmlp_bf, bmlp_p)

    return out[:B, :O]                                                # (B, O)


def init_params(key, input_dim, hidden_dim, output_dim):
    ks = jax.random.split(key, 4)
    scale = lambda fan_in: 1.0 / jnp.sqrt(jnp.float32(fan_in))
    return {
        "w1":   jax.random.normal(ks[0], (input_dim, hidden_dim), jnp.float32) * scale(input_dim),
        "watt": jax.random.normal(ks[1], (hidden_dim, 1), jnp.float32) * scale(hidden_dim),
        "batt": jnp.zeros((1, 1), jnp.float32),
        "wemb": jax.random.normal(ks[2], (hidden_dim, hidden_dim), jnp.float32) * scale(hidden_dim),
        "bemb": jnp.zeros((1, hidden_dim), jnp.float32),
        "wmlp": jax.random.normal(ks[3], (hidden_dim, output_dim), jnp.float32) * scale(hidden_dim),
        "bmlp": jnp.zeros((1, output_dim), jnp.float32),
    }


def mlp_reference(x, params):
    # Pure-JAX f32 reference for correctness checking.
    h = jnp.maximum(jnp.einsum("bsd,dh->bsh", x, params["w1"]), 0.0)
    att = jax.nn.sigmoid(jnp.einsum("bsh,ho->bso", h, params["watt"]) + params["batt"][0, 0])
    emb = jnp.einsum("bsh,hk->bsk", h, params["wemb"]) + params["bemb"][0]
    g = att * emb
    g = jnp.sum(g, axis=1) / g.shape[1] + jnp.max(g, axis=1)
    logits = g @ params["wmlp"] + params["bmlp"][0]
    return jax.nn.softmax(logits, axis=-1)


if __name__ == "__main__":
    # Small, deterministic shapes: batch=100, nodes/seq=8, features=16, hidden=32, classes=8.
    # With TB=32 the batch pads to 128 and the kernel runs 4 grid steps of 256 MXU rows
    # each (>=2 steps per TensorCore on v7x).
    B, S, D_IN, HIDDEN, D_OUT = 100, 8, 16, 32, 8

    key = jax.random.PRNGKey(0)
    kx, kp = jax.random.split(key)
    x = jax.random.normal(kx, (B, S, D_IN), jnp.float32)
    params = init_params(kp, D_IN, HIDDEN, D_OUT)

    out = mlp_forward(x, params)
    out = jax.block_until_ready(out)

    ref = mlp_reference(x, params)
    assert out.shape == (B, D_OUT)
    # bf16 MXU operands vs f32 reference -> loosened tolerance on the softmax outputs.
    assert jnp.allclose(out, ref, atol=2e-2, rtol=2e-2), "mismatch vs JAX reference"

    print("KERNEL_OK")
</pallas_src>

<mosaic_0001>
module attributes {stable_mosaic.version = 11 : i64} {
  func.func @mlp_kernel(%arg0: i32, %arg1: memref<32x8x16xf32, #tpu.memory_space<vmem>>, %arg2: memref<16x32xbf16, #tpu.memory_space<vmem>>, %arg3: memref<1x32xf32, #tpu.memory_space<vmem>>, %arg4: memref<1x1xf32, #tpu.memory_space<smem>>, %arg5: memref<32x32xbf16, #tpu.memory_space<vmem>>, %arg6: memref<1x32xf32, #tpu.memory_space<vmem>>, %arg7: memref<32x128xbf16, #tpu.memory_space<vmem>>, %arg8: memref<1x128xf32, #tpu.memory_space<vmem>>, %arg9: memref<32x128xf32, #tpu.memory_space<vmem>>) attributes {dimension_semantics = [#tpu.dimension_semantics<parallel>], iteration_bounds = array<i64: 4>, scalar_prefetch = 0 : i64, scratch_operands = 0 : i64, tpu.core_type = #tpu.core_type<tc>, window_params = [{transform_indices = @transform_0, window_bounds = array<i64: 32, 8, 16>}, {pipeline_mode = #tpu.pipeline_mode<synchronous>, transform_indices = @transform_1, window_bounds = array<i64: 16, 32>}, {pipeline_mode = #tpu.pipeline_mode<synchronous>, transform_indices = @transform_2, window_bounds = array<i64: 1, 32>}, {transform_indices = @transform_3, window_bounds = array<i64: 1, 1>}, {pipeline_mode = #tpu.pipeline_mode<synchronous>, transform_indices = @transform_4, window_bounds = array<i64: 32, 32>}, {pipeline_mode = #tpu.pipeline_mode<synchronous>, transform_indices = @transform_5, window_bounds = array<i64: 1, 32>}, {pipeline_mode = #tpu.pipeline_mode<synchronous>, transform_indices = @transform_6, window_bounds = array<i64: 32, 128>}, {pipeline_mode = #tpu.pipeline_mode<synchronous>, transform_indices = @transform_7, window_bounds = array<i64: 1, 128>}, {transform_indices = @transform_8, window_bounds = array<i64: 32, 128>}]} {
    %c0 = arith.constant 0 : index
    %c0_0 = arith.constant 0 : index
    %c0_1 = arith.constant 0 : index
    %0 = vector.load %arg1[%c0, %c0_0, %c0_1] : memref<32x8x16xf32, #tpu.memory_space<vmem>>, vector<32x8x16xf32>
    %1 = vector.shape_cast %0 : vector<32x8x16xf32> to vector<256x16xf32>
    %2 = arith.truncf %1 : vector<256x16xf32> to vector<256x16xbf16>
    %c0_2 = arith.constant 0 : index
    %c0_3 = arith.constant 0 : index
    %3 = vector.load %arg2[%c0_2, %c0_3] : memref<16x32xbf16, #tpu.memory_space<vmem>>, vector<16x32xbf16>
    %cst = arith.constant dense<0.000000e+00> : vector<256x32xf32>
    %4 = tpu.matmul %2, %3, %cst {dimension_numbers = #tpu.dot_dimension_numbers<[1], [0], [0], [1], [0, 0, 1, 1], [], []>} : vector<256x16xbf16>, vector<16x32xbf16>, vector<256x32xf32> -> vector<256x32xf32>
    %cst_4 = arith.constant 0.000000e+00 : f32
    %5 = vector.broadcast %cst_4 : f32 to vector<256x32xf32>
    %6 = arith.maximumf %4, %5 : vector<256x32xf32>
    %c0_5 = arith.constant 0 : index
    %c0_6 = arith.constant 0 : index
    %7 = vector.load %arg3[%c0_5, %c0_6] : memref<1x32xf32, #tpu.memory_space<vmem>>, vector<1x32xf32>
    %8 = vector.broadcast %7 : vector<1x32xf32> to vector<256x32xf32>
    %9 = arith.mulf %6, %8 : vector<256x32xf32>
    %cst_7 = arith.constant dense<0.000000e+00> : vector<256xf32>
    %10 = vector.multi_reduction <add>, %9, %cst_7 [1] : vector<256x32xf32> to vector<256xf32>
    %11 = vector.shape_cast %10 : vector<256xf32> to vector<256x1xf32>
    %c0_8 = arith.constant 0 : index
    %c0_9 = arith.constant 0 : index
    %12 = memref.load %arg4[%c0_8, %c0_9] : memref<1x1xf32, #tpu.memory_space<smem>>
    %13 = vector.broadcast %12 : f32 to vector<256x1xf32>
    %14 = arith.addf %11, %13 : vector<256x1xf32>
    %15 = arith.negf %14 : vector<256x1xf32>
    %16 = math.exp %15 : vector<256x1xf32>
    %cst_10 = arith.constant 1.000000e+00 : f32
    %17 = vector.broadcast %cst_10 : f32 to vector<256x1xf32>
    %18 = arith.addf %17, %16 : vector<256x1xf32>
    %19 = arith.divf %17, %18 : vector<256x1xf32>
    %20 = arith.truncf %6 : vector<256x32xf32> to vector<256x32xbf16>
    %c0_11 = arith.constant 0 : index
    %c0_12 = arith.constant 0 : index
    %21 = vector.load %arg5[%c0_11, %c0_12] : memref<32x32xbf16, #tpu.memory_space<vmem>>, vector<32x32xbf16>
    %cst_13 = arith.constant dense<0.000000e+00> : vector<256x32xf32>
    %22 = tpu.matmul %20, %21, %cst_13 {dimension_numbers = #tpu.dot_dimension_numbers<[1], [0], [0], [1], [0, 0, 1, 1], [], []>} : vector<256x32xbf16>, vector<32x32xbf16>, vector<256x32xf32> -> vector<256x32xf32>
    %c0_14 = arith.constant 0 : index
    %c0_15 = arith.constant 0 : index
    %23 = vector.load %arg6[%c0_14, %c0_15] : memref<1x32xf32, #tpu.memory_space<vmem>>, vector<1x32xf32>
    %24 = vector.broadcast %23 : vector<1x32xf32> to vector<256x32xf32>
    %25 = arith.addf %22, %24 : vector<256x32xf32>
    %26 = vector.broadcast %19 : vector<256x1xf32> to vector<256x32xf32>
    %27 = arith.mulf %26, %25 : vector<256x32xf32>
    %28 = vector.shape_cast %27 : vector<256x32xf32> to vector<32x8x32xf32>
    %cst_16 = arith.constant dense<0.000000e+00> : vector<32x32xf32>
    %29 = vector.multi_reduction <add>, %28, %cst_16 [1] : vector<32x8x32xf32> to vector<32x32xf32>
    %cst_17 = arith.constant 8.000000e+00 : f32
    %30 = vector.broadcast %cst_17 : f32 to vector<32x32xf32>
    %31 = arith.divf %29, %30 : vector<32x32xf32>
    %cst_18 = arith.constant dense<0xFF800000> : vector<32x32xf32>
    %32 = vector.multi_reduction <maximumf>, %28, %cst_18 [1] : vector<32x8x32xf32> to vector<32x32xf32>
    %33 = arith.addf %31, %32 : vector<32x32xf32>
    %34 = arith.truncf %33 : vector<32x32xf32> to vector<32x32xbf16>
    %c0_19 = arith.constant 0 : index
    %c0_20 = arith.constant 0 : index
    %35 = vector.load %arg7[%c0_19, %c0_20] : memref<32x128xbf16, #tpu.memory_space<vmem>>, vector<32x128xbf16>
    %cst_21 = arith.constant dense<0.000000e+00> : vector<32x128xf32>
    %36 = tpu.matmul %34, %35, %cst_21 {dimension_numbers = #tpu.dot_dimension_numbers<[1], [0], [0], [1], [0, 0, 1, 1], [], []>} : vector<32x32xbf16>, vector<32x128xbf16>, vector<32x128xf32> -> vector<32x128xf32>
    %c0_22 = arith.constant 0 : index
    %c0_23 = arith.constant 0 : index
    %37 = vector.load %arg8[%c0_22, %c0_23] : memref<1x128xf32, #tpu.memory_space<vmem>>, vector<1x128xf32>
    %38 = vector.broadcast %37 : vector<1x128xf32> to vector<32x128xf32>
    %39 = arith.addf %36, %38 : vector<32x128xf32>
    %cst_24 = arith.constant dense<0xFF800000> : vector<32xf32>
    %40 = vector.multi_reduction <maximumf>, %39, %cst_24 [1] : vector<32x128xf32> to vector<32xf32>
    %41 = vector.shape_cast %40 : vector<32xf32> to vector<32x1xf32>
    %42 = vector.broadcast %41 : vector<32x1xf32> to vector<32x128xf32>
    %43 = arith.subf %39, %42 : vector<32x128xf32>
    %44 = math.exp %43 : vector<32x128xf32>
    %cst_25 = arith.constant dense<0.000000e+00> : vector<32xf32>
    %45 = vector.multi_reduction <add>, %44, %cst_25 [1] : vector<32x128xf32> to vector<32xf32>
    %46 = vector.shape_cast %45 : vector<32xf32> to vector<32x1xf32>
    %47 = vector.broadcast %46 : vector<32x1xf32> to vector<32x128xf32>
    %48 = arith.divf %44, %47 : vector<32x128xf32>
    %c0_26 = arith.constant 0 : index
    %c0_27 = arith.constant 0 : index
    %49 = vector.load %arg9[%c0_26, %c0_27] : memref<32x128xf32, #tpu.memory_space<vmem>>, vector<32x128xf32>
    tpu.vector_store %arg9[%c0_26, %c0_27], %48 {strides = array<i32>} : memref<32x128xf32, #tpu.memory_space<vmem>>, vector<32x128xf32>,
    return
  }
  func.func @transform_0(%arg0: i32) -> (i32, i32, i32) {
    %c0_i32 = arith.constant 0 : i32
    %c0_i32_0 = arith.constant 0 : i32
    %c0_i32_1 = arith.constant 0 : i32
    return %arg0, %c0_i32, %c0_i32_0 : i32, i32, i32
  }
  func.func @transform_1(%arg0: i32) -> (i32, i32) {
    %c0_i32 = arith.constant 0 : i32
    %c0_i32_0 = arith.constant 0 : i32
    %c0_i32_1 = arith.constant 0 : i32
    return %c0_i32, %c0_i32_0 : i32, i32
  }
  func.func @transform_2(%arg0: i32) -> (i32, i32) {
    %c0_i32 = arith.constant 0 : i32
    %c0_i32_0 = arith.constant 0 : i32
    %c0_i32_1 = arith.constant 0 : i32
    return %c0_i32, %c0_i32_0 : i32, i32
  }
  func.func @transform_3(%arg0: i32) -> (i32, i32) {
    %c0_i32 = arith.constant 0 : i32
    %c0_i32_0 = arith.constant 0 : i32
    %c0_i32_1 = arith.constant 0 : i32
    return %c0_i32, %c0_i32_0 : i32, i32
  }
  func.func @transform_4(%arg0: i32) -> (i32, i32) {
    %c0_i32 = arith.constant 0 : i32
    %c0_i32_0 = arith.constant 0 : i32
    %c0_i32_1 = arith.constant 0 : i32
    return %c0_i32, %c0_i32_0 : i32, i32
  }
  func.func @transform_5(%arg0: i32) -> (i32, i32) {
    %c0_i32 = arith.constant 0 : i32
    %c0_i32_0 = arith.constant 0 : i32
    %c0_i32_1 = arith.constant 0 : i32
    return %c0_i32, %c0_i32_0 : i32, i32
  }
  func.func @transform_6(%arg0: i32) -> (i32, i32) {
    %c0_i32 = arith.constant 0 : i32
    %c0_i32_0 = arith.constant 0 : i32
    %c0_i32_1 = arith.constant 0 : i32
    return %c0_i32, %c0_i32_0 : i32, i32
  }
  func.func @transform_7(%arg0: i32) -> (i32, i32) {
    %c0_i32 = arith.constant 0 : i32
    %c0_i32_0 = arith.constant 0 : i32
    %c0_i32_1 = arith.constant 0 : i32
    return %c0_i32, %c0_i32_0 : i32, i32
  }
  func.func @transform_8(%arg0: i32) -> (i32, i32) {
    %c0_i32 = arith.constant 0 : i32
    %c0_i32_0 = arith.constant 0 : i32
    return %arg0, %c0_i32 : i32, i32
  }
}

</mosaic_0001>

<bundles_post_ra>
// kernel: tpu_custom_call.1
= control target key start
LH: loop header
LB: loop body
LE: loop exit
PB: predicated region body
PF: predicated region fallthrough
CT: control target
= control target key end

     0   :  { %s3284_s0 = inlined_call_operand.vmem [shape: f32[128,8,16], index: 0, kind: input, shape index: {}]   ;;  %s3285_s1 = inlined_call_operand.vmem [shape: bf16[16,32], index: 1, kind: input, shape index: {}]   ;;  %s3286_s2 = inlined_call_operand.vmem [shape: f32[1,32], index: 2, kind: input, shape index: {}]   ;;  %s3287_s3 = inlined_call_operand.<no memory space> [shape: f32[1,1], index: 3, kind: input, shape index: {}]   ;;  %s3288_s4 = inlined_call_operand.vmem [shape: bf16[32,32], index: 4, kind: input, shape index: {}]   ;;  %s3289_s5 = inlined_call_operand.vmem [shape: f32[1,32], index: 5, kind: input, shape index: {}]   ;;  %s3290_s6 = inlined_call_operand.vmem [shape: bf16[32,128], index: 6, kind: input, shape index: {}]   ;;  %s3291_s7 = inlined_call_operand.vmem [shape: f32[1,128], index: 7, kind: input, shape index: {}]   ;;  %s3292_s8 = inlined_call_operand.hbm [shape: f32[128,128], index: 8, kind: output, shape index: {}]  }
   0x1   :  { %13 = sst [smem:[#allocation2]] %s3287_s3 }
   0x2   :  { %14 = vsyncpa [#allocation4], 0 }
   0x3   :  { %16 = vsyncpa [#allocation4 + $0x1], 0  ;;  %s2599_s29 = smov 0   ;;  %s2601_s30 = smov 0  }
   0x4   :  { %s2603_s9 = smov 0   ;;  %s2605_s10 = smov 0  }
   0x5 LB: > { %s2620_s3 = sadd.s32 4294967295, %s2546_s10   ;;  %s2089_s11 = sadd.s32 4294967294, %s2546_s10   ;;  %s2546_s10 = sphi %s2605_s10, %s3325_s10   ;;  %s2542_s9 = sphi %s2603_s9, %s3324_s9   ;;  %s2538_s30 = sphi %s2601_s30, %s3323_s30   ;;  %s2534_s29 = sphi %s2599_s29, %s3322_s29  }
   0x6   : > { %s2624_s12 = sadd.s32 1, %s2546_s10   ;;  %s202_s13 = sadd.s32 1, %s2542_s9 }
   0x7   : > { %s199_s14 = ssub.s32 %s2546_s10, %s2624_s12  ;;  %p212_p0 = scmp.ne.s32.totalorder %s2542_s9, %s2538_s30 }
   0x8   : > { %p200_p1 = scmp.eq.s32.totalorder %s199_s14, 0  ;;  %p213_p2 = scmp.eq.s32.totalorder %s2620_s3, 3 }
   0x9   : > { %p218_p3 = scmp.ne.s32.totalorder %s2538_s30, %s2534_s29  ;;  %p219_p4 = scmp.eq.s32.totalorder %s2089_s11, 3 }
   0xa   : > { %s2635_s15 = scalar_select %p200_p1, %s2542_s9, %s202_s13  }
   0xb   : > { %p2637_p5 = por %p213_p2, %p212_p0  ;;  %p2641_p6 = por %p219_p4, %p218_p3 }
   0xc   : > { %p2092_p7 = scmp.ge.s32.totalorder %s2546_s10, 1  ;;  %p267_p8 = scmp.lt.s32.totalorder %s2546_s10, 5 }
   0xe   : > { %p268_p9 = pnand %p2092_p7, %p267_p8 }
  0x10   : > { %271 = sbr.rel (%p268_p9) target bundleno = 1205 (0x4b5), region = 52 }
  0x17   : > { %v2334_v0 = vld [vmem:[%s3285_s1] sm:$0xff]   ;;  %s2094_s20 = sshll.u32 %s2620_s3, 5  ;;  %vm365_vm0 = vcmask 130048   ;;  %v2336_v50 = vld [vmem:[%s3288_s4 + $0x8] sm:$0xff]   ;;  %vm646_vm1 = vcmask 261120   ;;  %s743_s14 = sld [smem:[#allocation2]] }
  0x18   : > { %p302_p10 = scmp.lt.s32.totalorder %s2094_s20, 127  ;;  %2215 = vmatprep.subr.bf16.mxu0 %v2334_v0  ;;  %v2335_v49 = vld [vmem:[%s3288_s4] sm:$0xff]   ;;  %vm1869_vm2 = vcmask 1041409   ;;  %vm1871_vm3 = vcmask 1042434   ;;  %vm1873_vm4 = vcmask 1043459   ;;  %vm1875_vm5 = vcmask 1044484  }
  0x19   : > { %2216 = vmatpush3.bf16.msra.mxu0 %v2334_v0  ;;  %2249 = vmatprep.subr.bf16.mxu1 %v2335_v49  ;;  %v2713_v52 = vld [vmem:[%s3286_s2] ss:$0 sm:$0xff]  ;;  %vm1877_vm6 = vcmask 1045509   ;;  %vm1879_vm7 = vcmask 1046534   ;;  %vm1881_vm8 = vcmask 1047559   ;;  %s298_s28 = sand.u32 1, %s2538_s30  }
  0x1a   : > { %s3327_s20 = smov (!%p302_p10, %s2094_s20), 127  ;;  %2250 = vmatpush3.bf16.msra.mxu1 %v2335_v49  ;;  %s2093_s11 = sshll.u32 %s298_s28, 5 }
  0x1b   : > { %s2095_s21 = sshll.u32 %s3327_s20, 3  ;;  %2251 = vmatprep.subr.bf16.mxu1 %v2336_v50  ;;  %s300_s13 = scalar_lea.vmem [#allocation3], %s2093_s11 }
  0x1c   : > { %s2654_s24 = scalar_lea.vmem %s3284_s0, %s2095_s21  ;;  %s2027_s18 = sshll.u32 %s300_s13, 4  ;;  %s3241_s18 = int_to_ptr.vmem [resolvable:$true] %s2027_s18 }
  0x1d   : > { %v309_v1 = vld [vmem:[%s2654_s24] sm:$0xff]  ;;  %v310_v2 = vld [vmem:[%s2654_s24 + $0x8] sm:$0xff]  ;;  %v311_v3 = vld [vmem:[%s2654_s24 + $0x10] sm:$0xff]  ;;  %s3243_s22 = scalar_lea.sflag [#allocation4], %s298_s28  ;;  %s2548_s23 = smov [#allocation3]  }
  0x1e   : > { %v341_v4 = vpack.c.bf16 %v310_v2, %v309_v1  ;;  %v312_v5 = vld [vmem:[%s2654_s24 + $0x18] sm:$0xff]  ;;  %v313_v6 = vld [vmem:[%s2654_s24 + $0x20] sm:$0xff]  ;;  %v314_v7 = vld [vmem:[%s2654_s24 + $0x28] sm:$0xff]  ;;  %2252 = vmatpush3.bf16.msra.mxu1 %v2336_v50 }
  0x1f   : > { %v342_v8 = vpack.c.bf16 %v312_v5, %v311_v3  ;;  %v343_v9 = vpack.c.bf16 %v314_v7, %v313_v6  ;;  %v315_v10 = vld [vmem:[%s2654_s24 + $0x30] sm:$0xff]  ;;  %v316_v11 = vld [vmem:[%s2654_s24 + $0x38] sm:$0xff]  ;;  %v317_v12 = vld [vmem:[%s2654_s24 + $0x40] sm:$0xff] }
  0x20   : > { %2217 = vmatprep.mubr.msk.bf16.mxu0 %vm365_vm0, %v341_v4  ;;  %v318_v13 = vld [vmem:[%s2654_s24 + $0x48] sm:$0xff]  ;;  %v344_v14 = vpack.c.bf16 %v316_v11, %v315_v10  ;;  %v319_v16 = vld [vmem:[%s2654_s24 + $0x50] sm:$0xff]  ;;  %v320_v17 = vld [vmem:[%s2654_s24 + $0x58] sm:$0xff] }
  0x21   : > { %2218 = vmatmul.mubr.msk.bf16.vlgmr.msra.gmra.mrb[0].mxu0 %vm365_vm0, %v342_v8  ;;  %v345_v15 = vpack.c.bf16 %v318_v13, %v317_v12  ;;  %v321_v18 = vld [vmem:[%s2654_s24 + $0x60] sm:$0xff]  ;;  %v322_v19 = vld [vmem:[%s2654_s24 + $0x68] sm:$0xff]  ;;  %v346_v20 = vpack.c.bf16 %v320_v17, %v319_v16  ;;  %v323_v22 = vld [vmem:[%s2654_s24 + $0x70] sm:$0xff] }
  0x22   : > { %2221 = vmatprep.mubr.msk.bf16.mxu0 %vm365_vm0, %v343_v9  ;;  %v347_v21 = vpack.c.bf16 %v322_v19, %v321_v18  ;;  %v324_v23 = vld [vmem:[%s2654_s24 + $0x78] sm:$0xff]  ;;  %v325_v24 = vld [vmem:[%s2654_s24 + $0x80] sm:$0xff]  ;;  %v326_v25 = vld [vmem:[%s2654_s24 + $0x88] sm:$0xff] }
  0x23   : > { %v348_v26 = vpack.c.bf16 %v324_v23, %v323_v22  ;;  %v349_v27 = vpack.c.bf16 %v326_v25, %v325_v24  ;;  %v327_v28 = vld [vmem:[%s2654_s24 + $0x90] sm:$0xff]  ;;  %v328_v29 = vld [vmem:[%s2654_s24 + $0x98] sm:$0xff]  ;;  %v329_v30 = vld [vmem:[%s2654_s24 + $0xa0] sm:$0xff] }
  0x24   : > { %v330_v31 = vld [vmem:[%s2654_s24 + $0xa8] sm:$0xff]  ;;  %v350_v32 = vpack.c.bf16 %v328_v29, %v327_v28  ;;  %v331_v34 = vld [vmem:[%s2654_s24 + $0xb0] sm:$0xff]  ;;  %v332_v35 = vld [vmem:[%s2654_s24 + $0xb8] sm:$0xff] }
  0x25   : > { %v351_v33 = vpack.c.bf16 %v330_v31, %v329_v30  ;;  %v333_v36 = vld [vmem:[%s2654_s24 + $0xc0] sm:$0xff]  ;;  %v334_v37 = vld [vmem:[%s2654_s24 + $0xc8] sm:$0xff]  ;;  %v352_v38 = vpack.c.bf16 %v332_v35, %v331_v34  ;;  %v335_v40 = vld [vmem:[%s2654_s24 + $0xd0] sm:$0xff] }
  0x26   : > { %v353_v39 = vpack.c.bf16 %v334_v37, %v333_v36  ;;  %v336_v41 = vld [vmem:[%s2654_s24 + $0xd8] sm:$0xff]  ;;  %v337_v42 = vld [vmem:[%s2654_s24 + $0xe0] sm:$0xff]  ;;  %v338_v43 = vld [vmem:[%s2654_s24 + $0xe8] sm:$0xff] }
  0x27   : > { %v354_v44 = vpack.c.bf16 %v336_v41, %v335_v40  ;;  %v355_v45 = vpack.c.bf16 %v338_v43, %v337_v42  ;;  %v339_v46 = vld [vmem:[%s2654_s24 + $0xf0] sm:$0xff]  ;;  %v340_v47 = vld [vmem:[%s2654_s24 + $0xf8] sm:$0xff]  ;;  %s2488_s24 = sshll.u32 %s2548_s23, 4  ;;  %s2489_s24 = int_to_ptr.vmem [resolvable:$false] %s2488_s24 }
  0x28   : > { %v356_v48 = vpack.c.bf16 %v340_v47, %v339_v46  ;;  %s2490_s25 = scalar_lea.vmem %s2489_s24, 1024  ;;  %p2491_p0 = scmp.lt.s32.totalorder %s3241_s18, %s2489_s24 }
  0x29   : > { %2222 = vmatmul.mubr.msk.bf16.gmra.mrb[4].mxu0 %vm365_vm0, %v344_v14 }
  0x2a   : > { %2225 = vmatprep.mubr.msk.bf16.mxu0 %vm365_vm0, %v345_v15 }
  0x31   : > { %2226 = vmatmul.mubr.msk.bf16.gmra.mrb[8].mxu0 %vm365_vm0, %v346_v20 }
  0x32   : > { %2229 = vmatprep.mubr.msk.bf16.mxu0 %vm365_vm0, %v347_v21 }
  0x39   : > { %2230 = vmatmul.mubr.msk.bf16.gmra.mrb[12].mxu0 %vm365_vm0, %v348_v26 }
  0x3a   : > { %2233 = vmatprep.mubr.msk.bf16.mxu0 %vm365_vm0, %v349_v27 }
  0x41   : > { %2234 = vmatmul.mubr.msk.bf16.gmra.mrb[16].mxu0 %vm365_vm0, %v350_v32 }
  0x42   : > { %2237 = vmatprep.mubr.msk.bf16.mxu0 %vm365_vm0, %v351_v33 }
  0x49   : > { %2238 = vmatmul.mubr.msk.bf16.gmra.mrb[20].mxu0 %vm365_vm0, %v352_v38 }
  0x4a   : > { %2241 = vmatprep.mubr.msk.bf16.mxu0 %vm365_vm0, %v353_v39 }
  0x51   : > { %2242 = vmatmul.mubr.msk.bf16.gmra.mrb[24].mxu0 %vm365_vm0, %v354_v44 }
  0x52   : > { %2245 = vmatprep.mubr.msk.bf16.mxu0 %vm365_vm0, %v355_v45 }
  0x59   : > { %2246 = vmatmul.mubr.msk.bf16.gmra.mrb[28].mxu0 %vm365_vm0, %v356_v48 }
  0xf4   : > { %v2219_v51 = vpop.f32.mrb[0].mxu0 }
  0xf5   : > { %v577_v53 = vmax.f32 %v2219_v51, 0.0  ;;  %v448_v54 = vpop.f32.mrb[1].mxu0 }
  0xf6   : > { %v575_v55 = vmax.f32 %v448_v54, 0.0  ;;  %v2220_v56 = vpop.f32.mrb[2].mxu0 }
  0xf7   : > { %v578_v57 = vmax.f32 %v2220_v56, 0.0  ;;  %v451_v58 = vpop.f32.mrb[3].mxu0  ;;  %v616_v59 = vmul.f32 %v2713_v52, %v577_v53 }
  0xf8   : > { %v576_v60 = vmax.f32 %v451_v58, 0.0  ;;  %v614_v63 = vmul.f32 %v2713_v52, %v575_v55 }
  0xf9   : > { %v970_v61 = vpack.c.bf16 %v578_v57, %v577_v53  ;;  %v653_v62 = vsel %vm646_vm1, %v616_v59, 0.0  ;;  %v617_v4 = vmul.f32 %v2713_v52, %v578_v57 }
  0xfa   : > { %654 = vadd.xlane.f32.xlu0 %v653_v62  ;;  %v969_v0 = vpack.c.bf16 %v576_v60, %v575_v55  ;;  %v647_v3 = vsel %vm646_vm1, %v614_v63, 0.0  ;;  %v615_v13 = vmul.f32 %v2713_v52, %v576_v60 }
  0xfb   : > { %v656_v12 = vsel %vm646_vm1, %v617_v4, 0.0 }
  0xfc   : > { %v2223_v1 = vpop.f32.mrb[4].mxu0  ;;  %2253 = vmatprep.mubr.msk.bf16.mxu1 %vm646_vm1, %v969_v0  ;;  %v650_v18 = vsel %vm646_vm1, %v615_v13, 0.0 }
  0xfd   : > { %v464_v2 = vpop.f32.mrb[5].mxu0  ;;  %2254 = vmatmul.mubr.msk.bf16.vlgmr.msra.gmra.mrb[0].mxu1 %vm646_vm1, %v970_v61  ;;  %v581_v6 = vmax.f32 %v2223_v1, 0.0 }
  0xfe   : > { %648 = vadd.xlane.f32.xlu0 %v647_v3  ;;  %v2224_v5 = vpop.f32.mrb[6].mxu0  ;;  %v579_v9 = vmax.f32 %v464_v2, 0.0 }
  0xff   : > { %v582_v7 = vmax.f32 %v2224_v5, 0.0  ;;  %v467_v8 = vpop.f32.mrb[7].mxu0  ;;  %v620_v19 = vmul.f32 %v2713_v52, %v581_v6 }
 0x100   : > { %v580_v10 = vmax.f32 %v467_v8, 0.0  ;;  %v618_v26 = vmul.f32 %v2713_v52, %v579_v9 }
 0x101   : > { %v972_v11 = vpack.c.bf16 %v582_v7, %v581_v6  ;;  %v665_v28 = vsel %vm646_vm1, %v620_v19, 0.0  ;;  %v621_v36 = vmul.f32 %v2713_v52, %v582_v7 }
 0x102   : > { %v971_v14 = vpack.c.bf16 %v580_v10, %v579_v9  ;;  %657 = vadd.xlane.f32.xlu0 %v656_v12  ;;  %v659_v34 = vsel %vm646_vm1, %v618_v26, 0.0  ;;  %v619_v44 = vmul.f32 %v2713_v52, %v580_v10 }
 0x103   : > { %v668_v46 = vsel %vm646_vm1, %v621_v36, 0.0 }
 0x104   : > { %v2227_v15 = vpop.f32.mrb[8].mxu0  ;;  %2257 = vmatprep.mubr.msk.bf16.mxu1 %vm646_vm1, %v971_v14  ;;  %v662_v54 = vsel %vm646_vm1, %v619_v44, 0.0 }
 0x105   : > { %v585_v16 = vmax.f32 %v2227_v15, 0.0  ;;  %v480_v17 = vpop.f32.mrb[9].mxu0  ;;  %2258 = vmatmul.mubr.msk.bf16.gmra.mrb[4].mxu1 %vm646_vm1, %v972_v11 }
 0x106   : > { %v583_v20 = vmax.f32 %v480_v17, 0.0  ;;  %651 = vadd.xlane.f32.xlu0 %v650_v18  ;;  %v2228_v21 = vpop.f32.mrb[10].mxu0 }
 0x107   : > { %v586_v22 = vmax.f32 %v2228_v21, 0.0  ;;  %v483_v23 = vpop.f32.mrb[11].mxu0  ;;  %v624_v24 = vmul.f32 %v2713_v52, %v585_v16 }
 0x108   : > { %v584_v25 = vmax.f32 %v483_v23, 0.0  ;;  %v622_v30 = vmul.f32 %v2713_v52, %v583_v20 }
 0x109   : > { %v974_v27 = vpack.c.bf16 %v586_v22, %v585_v16  ;;  %v677_v29 = vsel %vm646_vm1, %v624_v24, 0.0  ;;  %v625_v37 = vmul.f32 %v2713_v52, %v586_v22 }
 0x10a   : > { %v973_v31 = vpack.c.bf16 %v584_v25, %v583_v20  ;;  %666 = vadd.xlane.f32.xlu0 %v665_v28  ;;  %678 = vadd.xlane.f32.xlu1 %v677_v29  ;;  %v671_v35 = vsel %vm646_vm1, %v622_v30, 0.0  ;;  %v623_v48 = vmul.f32 %v2713_v52, %v584_v25 }
 0x10b   : > { %v680_v47 = vsel %vm646_vm1, %v625_v37, 0.0 }
 0x10c   : > { %v2231_v32 = vpop.f32.mrb[12].mxu0  ;;  %2261 = vmatprep.mubr.msk.bf16.mxu1 %vm646_vm1, %v973_v31  ;;  %v674_v55 = vsel %vm646_vm1, %v623_v48, 0.0 }
 0x10d   : > { %v496_v33 = vpop.f32.mrb[13].mxu0  ;;  %2262 = vmatmul.mubr.msk.bf16.gmra.mrb[8].mxu1 %vm646_vm1, %v974_v27  ;;  %v589_v39 = vmax.f32 %v2231_v32, 0.0 }
 0x10e   : > { %660 = vadd.xlane.f32.xlu0 %v659_v34  ;;  %672 = vadd.xlane.f32.xlu1 %v671_v35  ;;  %v2232_v38 = vpop.f32.mrb[14].mxu0  ;;  %v587_v42 = vmax.f32 %v496_v33, 0.0 }
 0x10f   : > { %v590_v40 = vmax.f32 %v2232_v38, 0.0  ;;  %v499_v41 = vpop.f32.mrb[15].mxu0  ;;  %v628_v56 = vmul.f32 %v2713_v52, %v589_v39 }
 0x110   : > { %v588_v43 = vmax.f32 %v499_v41, 0.0  ;;  %v626_v63 = vmul.f32 %v2713_v52, %v587_v42 }
 0x111   : > { %v976_v45 = vpack.c.bf16 %v590_v40, %v589_v39  ;;  %v689_v1 = vsel %vm646_vm1, %v628_v56, 0.0  ;;  %v629_v9 = vmul.f32 %v2713_v52, %v590_v40 }
 0x112   : > { %v975_v49 = vpack.c.bf16 %v588_v43, %v587_v42  ;;  %669 = vadd.xlane.f32.xlu0 %v668_v46  ;;  %681 = vadd.xlane.f32.xlu1 %v680_v47  ;;  %v683_v7 = vsel %vm646_vm1, %v626_v63, 0.0  ;;  %v627_v17 = vmul.f32 %v2713_v52, %v588_v43 }
 0x113   : > { %v692_v19 = vsel %vm646_vm1, %v629_v9, 0.0 }
 0x114   : > { %v2235_v50 = vpop.f32.mrb[16].mxu0  ;;  %2265 = vmatprep.mubr.msk.bf16.mxu1 %vm646_vm1, %v975_v49  ;;  %v686_v27 = vsel %vm646_vm1, %v627_v17, 0.0 }
 0x115   : > { %v593_v51 = vmax.f32 %v2235_v50, 0.0  ;;  %v512_v53 = vpop.f32.mrb[17].mxu0  ;;  %2266 = vmatmul.mubr.msk.bf16.gmra.mrb[12].mxu1 %vm646_vm1, %v976_v45 }
 0x116   : > { %v591_v57 = vmax.f32 %v512_v53, 0.0  ;;  %663 = vadd.xlane.f32.xlu0 %v662_v54  ;;  %675 = vadd.xlane.f32.xlu1 %v674_v55  ;;  %v2236_v58 = vpop.f32.mrb[18].mxu0 }
 0x117   : > { %v594_v59 = vmax.f32 %v2236_v58, 0.0  ;;  %v515_v60 = vpop.f32.mrb[19].mxu0  ;;  %v632_v61 = vmul.f32 %v2713_v52, %v593_v51 }
 0x118   : > { %v592_v62 = vmax.f32 %v515_v60, 0.0  ;;  %v630_v3 = vmul.f32 %v2713_v52, %v591_v57 }
 0x119   : > { %v978_v0 = vpack.c.bf16 %v594_v59, %v593_v51  ;;  %v701_v2 = vsel %vm646_vm1, %v632_v61, 0.0  ;;  %v633_v10 = vmul.f32 %v2713_v52, %v594_v59 }
 0x11a   : > { %v977_v4 = vpack.c.bf16 %v592_v62, %v591_v57  ;;  %690 = vadd.xlane.f32.xlu1 %v689_v1  ;;  %702 = vadd.xlane.f32.xlu0 %v701_v2  ;;  %v695_v8 = vsel %vm646_vm1, %v630_v3, 0.0  ;;  %v631_v24 = vmul.f32 %v2713_v52, %v592_v62 }
 0x11b   : > { %v704_v20 = vsel %vm646_vm1, %v633_v10, 0.0 }
 0x11c   : > { %v2239_v5 = vpop.f32.mrb[20].mxu0  ;;  %2269 = vmatprep.mubr.msk.bf16.mxu1 %vm646_vm1, %v977_v4  ;;  %v698_v35 = vsel %vm646_vm1, %v631_v24, 0.0 }
 0x11d   : > { %v528_v6 = vpop.f32.mrb[21].mxu0  ;;  %2270 = vmatmul.mubr.msk.bf16.gmra.mrb[16].mxu1 %vm646_vm1, %v978_v0  ;;  %v597_v13 = vmax.f32 %v2239_v5, 0.0 }
 0x11e   : > { %v595_v11 = vmax.f32 %v528_v6, 0.0  ;;  %684 = vadd.xlane.f32.xlu1 %v683_v7  ;;  %696 = vadd.xlane.f32.xlu0 %v695_v8  ;;  %v2240_v12 = vpop.f32.mrb[22].mxu0  ;;  %v2795_v7 = vstv %s743_s14  ;;  %s2175_s14 = sshll.u32 %s2620_s3, 9  ;;  %s2484_s3 = scalar_lea.vmem %s3241_s18, 512 }
 0x11f   : > { %v598_v14 = vmax.f32 %v2240_v12, 0.0  ;;  %v531_v15 = vpop.f32.mrb[23].mxu0  ;;  %v636_v42 = vmul.f32 %v2713_v52, %v597_v13  ;;  %s3239_s21 = scalar_lea.hbm %s3292_s8, %s2175_s14  ;;  %p2485_p11 = scmp.ne.s32.totalorder %s3241_s18, %s2484_s3 }
 0x120   : > { %v596_v16 = vmax.f32 %v531_v15, 0.0  ;;  %v634_v21 = vmul.f32 %v2713_v52, %v595_v11  ;;  %p2492_p1 = scmp.lt.s32.totalorder %s2490_s25, %s2484_s3 }
 0x121   : > { %v980_v18 = vpack.c.bf16 %v598_v14, %v597_v13  ;;  %v713_v55 = vsel %vm646_vm1, %v636_v42, 0.0  ;;  %v637_v56 = vmul.f32 %v2713_v52, %v598_v14  ;;  %p2486_p12 = pnand %p2485_p11, %p2637_p5 }
 0x122   : > { %v979_v22 = vpack.c.bf16 %v596_v16, %v595_v11  ;;  %693 = vadd.xlane.f32.xlu1 %v692_v19  ;;  %705 = vadd.xlane.f32.xlu0 %v704_v20  ;;  %v707_v28 = vsel %vm646_vm1, %v634_v21, 0.0  ;;  %v635_v29 = vmul.f32 %v2713_v52, %v596_v16  ;;  %p2493_p2 = por %p2492_p1, %p2491_p0 }
 0x123   : > { %v716_v0 = vsel %vm646_vm1, %v637_v56, 0.0  ;;  %p2487_p13 = pneg %p2486_p12 }
 0x124   : > { %v2243_v23 = vpop.f32.mrb[24].mxu0  ;;  %2273 = vmatprep.mubr.msk.bf16.mxu1 %vm646_vm1, %v979_v22  ;;  %v710_v37 = vsel %vm646_vm1, %v635_v29, 0.0 }
 0x125   : > { %v601_v25 = vmax.f32 %v2243_v23, 0.0  ;;  %v544_v26 = vpop.f32.mrb[25].mxu0  ;;  %2274 = vmatmul.mubr.msk.bf16.gmra.mrb[20].mxu1 %vm646_vm1, %v980_v18  ;;  %p2494_p3 = pnand %p2493_p2, %p2487_p13 }
 0x126   : > { %v599_v30 = vmax.f32 %v544_v26, 0.0  ;;  %687 = vadd.xlane.f32.xlu1 %v686_v27  ;;  %708 = vadd.xlane.f32.xlu0 %v707_v28  ;;  %v2244_v31 = vpop.f32.mrb[26].mxu0 }
 0x127   : > { %v602_v32 = vmax.f32 %v2244_v31, 0.0  ;;  %v547_v33 = vpop.f32.mrb[27].mxu0  ;;  %v640_v38 = vmul.f32 %v2713_v52, %v601_v25 }
 0x128   : > { %v600_v34 = vmax.f32 %v547_v33, 0.0  ;;  %v638_v39 = vmul.f32 %v2713_v52, %v599_v30 }
 0x129   : > { %v982_v36 = vpack.c.bf16 %v602_v32, %v601_v25  ;;  %v725_v45 = vsel %vm646_vm1, %v640_v38, 0.0  ;;  %v641_v47 = vmul.f32 %v2713_v52, %v602_v32 }
 0x12a   : > { %v981_v40 = vpack.c.bf16 %v600_v34, %v599_v30  ;;  %699 = vadd.xlane.f32.xlu1 %v698_v35  ;;  %711 = vadd.xlane.f32.xlu0 %v710_v37  ;;  %v719_v46 = vsel %vm646_vm1, %v638_v39, 0.0  ;;  %v639_v60 = vmul.f32 %v2713_v52, %v600_v34 }
 0x12b   : > { %v728_v59 = vsel %vm646_vm1, %v641_v47, 0.0 }
 0x12c   : > { %v2247_v41 = vpop.f32.mrb[28].mxu0  ;;  %2277 = vmatprep.mubr.msk.bf16.mxu1 %vm646_vm1, %v981_v40  ;;  %v722_v1 = vsel %vm646_vm1, %v639_v60, 0.0 }
 0x12d   : > { %v605_v43 = vmax.f32 %v2247_v41, 0.0  ;;  %v560_v44 = vpop.f32.mrb[29].mxu0  ;;  %2278 = vmatmul.mubr.msk.bf16.gmra.mrb[24].mxu1 %vm646_vm1, %v982_v36  ;;  %v2337_v36 = vld [vmem:[%s3290_s6] sm:$0xff]  }
 0x12e   : > { %v603_v48 = vmax.f32 %v560_v44, 0.0  ;;  %726 = vadd.xlane.f32.xlu1 %v725_v45  ;;  %720 = vadd.xlane.f32.xlu0 %v719_v46  ;;  %v2248_v49 = vpop.f32.mrb[30].mxu0 }
 0x12f   : > { %v606_v50 = vmax.f32 %v2248_v49, 0.0  ;;  %v563_v51 = vpop.f32.mrb[31].mxu0  ;;  %v644_v53 = vmul.f32 %v2713_v52, %v605_v43  ;;  %2285 = vmatprep.subr.bf16.mxu0 %v2337_v36 }
 0x130   : > { %v604_v54 = vmax.f32 %v563_v51, 0.0  ;;  %v642_v57 = vmul.f32 %v2713_v52, %v603_v48  ;;  %2286 = vmatpush3.bf16.msra.mxu0 %v2337_v36 }
 0x131   : > { %v984_v58 = vpack.c.bf16 %v606_v50, %v605_v43  ;;  %v645_v61 = vmul.f32 %v2713_v52, %v606_v50  ;;  %v737_v2 = vsel %vm646_vm1, %v644_v53, 0.0 }
 0x132   : > { %v983_v62 = vpack.c.bf16 %v604_v54, %v603_v48  ;;  %714 = vadd.xlane.f32.xlu0 %v713_v55  ;;  %729 = vadd.xlane.f32.xlu1 %v728_v59  ;;  %v643_v63 = vmul.f32 %v2713_v52, %v604_v54  ;;  %v731_v3 = vsel %vm646_vm1, %v642_v57, 0.0 }
 0x133   : > { %v740_v52 = vsel %vm646_vm1, %v645_v61, 0.0 }
 0x134   : > { %2281 = vmatprep.mubr.msk.bf16.mxu1 %vm646_vm1, %v983_v62  ;;  %v734_v4 = vsel %vm646_vm1, %v643_v63, 0.0 }
 0x135   : > { %2282 = vmatmul.mubr.msk.bf16.gmra.mrb[28].mxu1 %vm646_vm1, %v984_v58 }
 0x136   : > { %717 = vadd.xlane.f32.xlu0 %v716_v0  ;;  %723 = vadd.xlane.f32.xlu1 %v722_v1 }
 0x13a   : > { %738 = vadd.xlane.f32.xlu1 %v737_v2 }
 0x13e   : > { %732 = vadd.xlane.f32.xlu1 %v731_v3 }
 0x142   : > { %735 = vadd.xlane.f32.xlu1 %v734_v4 }
 0x146   : > { %741 = vadd.xlane.f32.xlu1 %v740_v52 }
 0x187   : > { %v655_v5 = vpop.xlane.xlu0 %654 }
 0x188   : > { %v747_v9 = vadd.f32 %v2795_v7, %v655_v5 }
 0x18a   : > { %v2116_v12 = vmul.f32 -1.442695, %v747_v9 }
 0x18b   : > { %v649_v6 = vpop.xlane.xlu0 %648 }
 0x18c   : > { %v745_v10 = vadd.f32 %v2795_v7, %v649_v6  ;;  %2339 = vpow2.f32 %v2116_v12 }
 0x18e   : > { %v2114_v14 = vmul.f32 -1.442695, %v745_v10 }
 0x18f   : > { %v658_v8 = vpop.xlane.xlu0 %657 }
 0x190   : > { %v748_v13 = vadd.f32 %v2795_v7, %v658_v8  ;;  %2341 = vpow2.f32 %v2114_v14 }
 0x192   : > { %v2117_v18 = vmul.f32 -1.442695, %v748_v13 }
 0x193   : > { %v652_v11 = vpop.xlane.xlu0 %651 }
 0x194   : > { %v746_v15 = vadd.f32 %v2795_v7, %v652_v11  ;;  %2343 = vpow2.f32 %v2117_v18 }
 0x196   : > { %v2115_v20 = vmul.f32 -1.442695, %v746_v15  ;;  %v2340_v30 = vpop.eup %2339 }
 0x197   : > { %v667_v16 = vpop.xlane.xlu0 %666  ;;  %v679_v17 = vpop.xlane.xlu1 %678  ;;  %v875_v37 = vadd.f32 1.0, %v2340_v30 }
 0x198   : > { %v751_v19 = vadd.f32 %v2795_v7, %v667_v16  ;;  %v755_v23 = vadd.f32 %v2795_v7, %v679_v17  ;;  %2345 = vpow2.f32 %v2115_v20 }
 0x19a   : > { %v2120_v24 = vmul.f32 -1.442695, %v751_v19  ;;  %v2124_v28 = vmul.f32 -1.442695, %v755_v23  ;;  %v2342_v34 = vpop.eup %2341 }
 0x19b   : > { %v661_v21 = vpop.xlane.xlu0 %660  ;;  %v673_v22 = vpop.xlane.xlu1 %672  ;;  %v873_v43 = vadd.f32 1.0, %v2342_v34 }
 0x19c   : > { %v749_v25 = vadd.f32 %v2795_v7, %v661_v21  ;;  %2347 = vpow2.f32 %v2120_v24  ;;  %v753_v31 = vadd.f32 %v2795_v7, %v673_v22 }
 0x19d   : > { %2349 = vpow2.f32 %v2124_v28 }
 0x19e   : > { %v2118_v29 = vmul.f32 -1.442695, %v749_v25  ;;  %v2344_v38 = vpop.eup %2343  ;;  %v2122_v39 = vmul.f32 -1.442695, %v753_v31 }
 0x19f   : > { %v670_v26 = vpop.xlane.xlu0 %669  ;;  %v682_v27 = vpop.xlane.xlu1 %681  ;;  %v876_v47 = vadd.f32 1.0, %v2344_v38 }
 0x1a0   : > { %v752_v35 = vadd.f32 %v2795_v7, %v670_v26  ;;  %2351 = vpow2.f32 %v2118_v29  ;;  %v756_v40 = vadd.f32 %v2795_v7, %v682_v27 }
 0x1a1   : > { %2353 = vrcp.f32 %v875_v37 }
 0x1a2   : > { %v2346_v44 = vpop.eup %2345  ;;  %v2121_v45 = vmul.f32 -1.442695, %v752_v35  ;;  %2355 = vpow2.f32 %v2122_v39  ;;  %v2125_v49 = vmul.f32 -1.442695, %v756_v40 }
 0x1a3   : > { %v664_v32 = vpop.xlane.xlu0 %663  ;;  %v676_v33 = vpop.xlane.xlu1 %675  ;;  %2357 = vrcp.f32 %v873_v43  ;;  %v874_v54 = vadd.f32 1.0, %v2346_v44 }
 0x1a4   : > { %v750_v46 = vadd.f32 %v2795_v7, %v664_v32  ;;  %v754_v50 = vadd.f32 %v2795_v7, %v676_v33  ;;  %2359 = vpow2.f32 %v2121_v45 }
 0x1a5   : > { %2361 = vrcp.f32 %v876_v47 }
 0x1a6   : > { %v2348_v48 = vpop.eup %2347  ;;  %v2119_v56 = vmul.f32 -1.442695, %v750_v46  ;;  %2363 = vpow2.f32 %v2125_v49  ;;  %v2123_v60 = vmul.f32 -1.442695, %v754_v50 }
 0x1a7   : > { %v691_v41 = vpop.xlane.xlu1 %690  ;;  %v703_v42 = vpop.xlane.xlu0 %702  ;;  %v879_v58 = vadd.f32 1.0, %v2348_v48  ;;  %2365 = vrcp.f32 %v874_v54 }
 0x1a8   : > { %v759_v55 = vadd.f32 %v2795_v7, %v691_v41  ;;  %v2350_v57 = vpop.eup %2349  ;;  %v763_v59 = vadd.f32 %v2795_v7, %v703_v42  ;;  %2367 = vpow2.f32 %v2119_v56 }
 0x1a9   : > { %v883_v2 = vadd.f32 1.0, %v2350_v57  ;;  %2369 = vrcp.f32 %v879_v58 }
 0x1aa   : > { %v2352_v63 = vpop.eup %2351  ;;  %v2128_v0 = vmul.f32 -1.442695, %v759_v55  ;;  %v2132_v4 = vmul.f32 -1.442695, %v763_v59  ;;  %2371 = vpow2.f32 %v2123_v60 }
 0x1ab   : > { %v685_v51 = vpop.xlane.xlu1 %684  ;;  %v697_v53 = vpop.xlane.xlu0 %696  ;;  %v877_v5 = vadd.f32 1.0, %v2352_v63 }
 0x1ac   : > { %v757_v1 = vadd.f32 %v2795_v7, %v685_v51  ;;  %v761_v3 = vadd.f32 %v2795_v7, %v697_v53  ;;  %v2818_v10 = vpop.eup %2353  ;;  %2373 = vpow2.f32 %v2128_v0 }
 0x1ad   : > { %v2356_v12 = vpop.eup %2355  ;;  %2375 = vrcp.f32 %v883_v2 }
 0x1ae   : > { %v2126_v11 = vmul.f32 -1.442695, %v757_v1  ;;  %v2130_v13 = vmul.f32 -1.442695, %v761_v3  ;;  %v2821_v15 = vpop.eup %2357  ;;  %2377 = vpow2.f32 %v2132_v4  ;;  %v881_v23 = vadd.f32 1.0, %v2356_v12 }
 0x1af   : > { %v694_v61 = vpop.xlane.xlu1 %693  ;;  %v706_v62 = vpop.xlane.xlu0 %705  ;;  %2379 = vrcp.f32 %v877_v5 }
 0x1b0   : > { %v760_v52 = vadd.f32 %v2795_v7, %v694_v61  ;;  %v764_v6 = vadd.f32 %v2795_v7, %v706_v62  ;;  %v2360_v17 = vpop.eup %2359  ;;  %2381 = vpow2.f32 %v2126_v11 }
 0x1b1   : > { %v2824_v22 = vpop.eup %2361  ;;  %2383 = vpow2.f32 %v2130_v13  ;;  %v880_v28 = vadd.f32 1.0, %v2360_v17 }
 0x1b2   : > { %v2129_v16 = vmul.f32 -1.442695, %v760_v52  ;;  %v2133_v18 = vmul.f32 -1.442695, %v764_v6  ;;  %v2364_v24 = vpop.eup %2363 }
 0x1b3   : > { %v688_v8 = vpop.xlane.xlu1 %687  ;;  %v709_v9 = vpop.xlane.xlu0 %708  ;;  %v884_v35 = vadd.f32 1.0, %v2364_v24  ;;  %v2856_v24 = vld [vmem:[%s3289_s5] ss:$0 sm:$0xff] }
 0x1b4   : > { %v758_v14 = vadd.f32 %v2795_v7, %v688_v8  ;;  %v765_v19 = vadd.f32 %v2795_v7, %v709_v9  ;;  %v2827_v27 = vpop.eup %2365  ;;  %2385 = vpow2.f32 %v2129_v16 }
 0x1b5   : > { %v2368_v29 = vpop.eup %2367  ;;  %2387 = vpow2.f32 %v2133_v18 }
 0x1b6   : > { %v2127_v25 = vmul.f32 -1.442695, %v758_v14  ;;  %v2134_v30 = vmul.f32 -1.442695, %v765_v19  ;;  %v2830_v34 = vpop.eup %2369  ;;  %2389 = vrcp.f32 %v881_v23  ;;  %v878_v39 = vadd.f32 1.0, %v2368_v29 }
 0x1b7   : > { %v700_v20 = vpop.xlane.xlu1 %699  ;;  %v712_v21 = vpop.xlane.xlu0 %711 }
 0x1b8   : > { %v762_v26 = vadd.f32 %v2795_v7, %v700_v20  ;;  %v766_v31 = vadd.f32 %v2795_v7, %v712_v21  ;;  %v2372_v36 = vpop.eup %2371  ;;  %2391 = vpow2.f32 %v2127_v25 }
 0x1b9   : > { %v2374_v38 = vpop.eup %2373  ;;  %2393 = vrcp.f32 %v880_v28  ;;  %v882_v45 = vadd.f32 1.0, %v2372_v36 }
 0x1ba   : > { %v2131_v37 = vmul.f32 -1.442695, %v762_v26  ;;  %v2833_v41 = vpop.eup %2375  ;;  %2395 = vpow2.f32 %v2134_v30  ;;  %v2135_v42 = vmul.f32 -1.442695, %v766_v31  ;;  %v887_v49 = vadd.f32 1.0, %v2374_v38 }
 0x1bb   : > { %v727_v32 = vpop.xlane.xlu1 %726  ;;  %v721_v33 = vpop.xlane.xlu0 %720  ;;  %2397 = vrcp.f32 %v884_v35 }
 0x1bc   : > { %v771_v40 = vadd.f32 %v2795_v7, %v727_v32  ;;  %v2378_v44 = vpop.eup %2377  ;;  %v769_v46 = vadd.f32 %v2795_v7, %v721_v33  ;;  %2399 = vpow2.f32 %v2131_v37 }
 0x1bd   : > { %v2836_v48 = vpop.eup %2379  ;;  %2401 = vrcp.f32 %v878_v39  ;;  %v891_v54 = vadd.f32 1.0, %v2378_v44 }
 0x1be   : > { %v2382_v50 = vpop.eup %2381  ;;  %v2140_v51 = vmul.f32 -1.442695, %v771_v40  ;;  %2403 = vpow2.f32 %v2135_v42  ;;  %v2138_v56 = vmul.f32 -1.442695, %v769_v46 }
 0x1bf   : > { %v730_v43 = vpop.xlane.xlu1 %729  ;;  %v715_v47 = vpop.xlane.xlu0 %714  ;;  %2405 = vrcp.f32 %v882_v45  ;;  %v885_v59 = vadd.f32 1.0, %v2382_v50 }
 0x1c0   : > { %v2384_v53 = vpop.eup %2383  ;;  %2407 = vrcp.f32 %v887_v49  ;;  %v767_v60 = vadd.f32 %v2795_v7, %v715_v47  ;;  %v772_v2 = vadd.f32 %v2795_v7, %v730_v43 }
 0x1c1   : > { %v2386_v55 = vpop.eup %2385  ;;  %v889_v62 = vadd.f32 1.0, %v2384_v53  ;;  %2409 = vpow2.f32 %v2140_v51 }
 0x1c2   : > { %v2388_v58 = vpop.eup %2387  ;;  %2411 = vrcp.f32 %v891_v54  ;;  %v888_v1 = vadd.f32 1.0, %v2386_v55  ;;  %v2136_v5 = vmul.f32 -1.442695, %v767_v60  ;;  %v2141_v13 = vmul.f32 -1.442695, %v772_v2 }
 0x1c3   : > { %v724_v57 = vpop.xlane.xlu1 %723  ;;  %v2839_v61 = vpop.eup %2389  ;;  %v892_v4 = vadd.f32 1.0, %v2388_v58  ;;  %2413 = vpow2.f32 %v2138_v56 }
 0x1c4   : > { %v718_v63 = vpop.xlane.xlu0 %717  ;;  %v2392_v0 = vpop.eup %2391  ;;  %2415 = vrcp.f32 %v885_v59  ;;  %v770_v14 = vadd.f32 %v2795_v7, %v724_v57 }
 0x1c5   : > { %v2842_v3 = vpop.eup %2393  ;;  %v768_v6 = vadd.f32 %v2795_v7, %v718_v63  ;;  %2417 = vrcp.f32 %v889_v62  ;;  %v886_v9 = vadd.f32 1.0, %v2392_v0 }
 0x1c6   : > { %v2396_v52 = vpop.eup %2395  ;;  %2419 = vrcp.f32 %v888_v1  ;;  %v2139_v26 = vmul.f32 -1.442695, %v770_v14 }
 0x1c7   : > { %v2845_v8 = vpop.eup %2397  ;;  %v739_v11 = vpop.xlane.xlu1 %738  ;;  %2421 = vrcp.f32 %v892_v4  ;;  %v893_v17 = vadd.f32 1.0, %v2396_v52  ;;  %v2137_v19 = vmul.f32 -1.442695, %v768_v6 }
 0x1c8   : > { %v2400_v12 = vpop.eup %2399  ;;  %2423 = vpow2.f32 %v2136_v5  ;;  %v775_v20 = vadd.f32 %v2795_v7, %v739_v11 }
 0x1c9   : > { %v2848_v16 = vpop.eup %2401  ;;  %2425 = vrcp.f32 %v886_v9  ;;  %v890_v23 = vadd.f32 1.0, %v2400_v12 }
 0x1ca   : > { %v2404_v18 = vpop.eup %2403  ;;  %2427 = vpow2.f32 %v2141_v13  ;;  %v2144_v33 = vmul.f32 -1.442695, %v775_v20 }
 0x1cb   : > { %v2851_v21 = vpop.eup %2405  ;;  %2429 = vrcp.f32 %v893_v17  ;;  %v894_v29 = vadd.f32 1.0, %v2404_v18  ;;  %v733_v30 = vpop.xlane.xlu1 %732 }
 0x1cc   : > { %v2858_v25 = vpop.eup %2407  ;;  %2431 = vpow2.f32 %v2137_v19  ;;  %v773_v43 = vadd.f32 %v2795_v7, %v733_v30 }
 0x1cd   : > { %v2410_v28 = vpop.eup %2409  ;;  %2433 = vrcp.f32 %v890_v23 }
 0x1ce   : > { %v2860_v32 = vpop.eup %2411  ;;  %v899_v42 = vadd.f32 1.0, %v2410_v28  ;;  %2435 = vpow2.f32 %v2139_v26  ;;  %v2142_v62 = vmul.f32 -1.442695, %v773_v43 }
 0x1cf   : > { %v2414_v37 = vpop.eup %2413  ;;  %2437 = vrcp.f32 %v894_v29 }
 0x1d0   : > { %v2255_v31 = vpop.f32.mrb[0].mxu1  ;;  %v2864_v40 = vpop.eup %2415  ;;  %v897_v53 = vadd.f32 1.0, %v2414_v37  ;;  %2439 = vpow2.f32 %v2144_v33 }
 0x1d1   : > { %v1099_v35 = vadd.f32 %v2255_v31, %v2856_v24  ;;  %v1090_v36 = vpop.f32.mrb[1].mxu1  ;;  %v2868_v46 = vpop.eup %2417  ;;  %2441 = vrcp.f32 %v899_v42 }
 0x1d2   : > { %v1091_v38 = vadd.f32 %v2856_v24, %v1090_v36  ;;  %v2256_v39 = vpop.f32.mrb[2].mxu1  ;;  %v2873_v51 = vpop.eup %2419  ;;  %2443 = vrcp.f32 %v897_v53 }
 0x1d3   : > { %v1219_v44 = vmul.f32 %v2818_v10, %v1099_v35  ;;  %v1093_v45 = vpop.f32.mrb[3].mxu1  ;;  %v1102_v49 = vadd.f32 %v2256_v39, %v2856_v24  ;;  %v2877_v56 = vpop.eup %2421  ;;  %2445 = vpow2.f32 %v2142_v62 }
 0x1d4   : > { %v1217_v47 = vmul.f32 %v2821_v15, %v1091_v38  ;;  %v1094_v50 = vadd.f32 %v2856_v24, %v1093_v45  ;;  %v736_v10 = vpop.xlane.xlu1 %735  ;;  %v2424_v60 = vpop.eup %2423 }
 0x1d5   : > { %v1263_v54 = vsel %vm646_vm1, %v1219_v44, 0.0  ;;  %v1520_v55 = vsel %vm646_vm1, %v1219_v44, -inf  ;;  %v2881_v1 = vpop.eup %2425  ;;  %v1220_v52 = vmul.f32 %v2824_v22, %v1102_v49  ;;  %v774_v11 = vadd.f32 %v2795_v7, %v736_v10 }
 0x1d6   : > { %v1264_v57 = vrot.slane %v1263_v54, 4  ;;  %v1521_v58 = vrot.slane %v1520_v55, 4  ;;  %v1249_v59 = vsel %vm646_vm1, %v1217_v47, 0.0  ;;  %v1506_v15 = vsel %vm646_vm1, %v1217_v47, -inf  ;;  %v2428_v9 = vpop.eup %2427 }
 0x1d7   : > { %v1250_v63 = vrot.slane %v1249_v59, 4  ;;  %v1507_v0 = vrot.slane %v1506_v15, 4  ;;  %v1218_v5 = vmul.f32 %v2827_v27, %v1094_v50  ;;  %v2888_v17 = vpop.eup %2429  ;;  %v1270_v20 = vsel %vm646_vm1, %v1220_v52, 0.0 }
 0x1d8   : > { %v1265_v2 = vadd.f32 %v1264_v57, %v1263_v54  ;;  %v1522_v4 = vmax.f32 %v1520_v55, %v1521_v58  ;;  %v2885_v6 = vpop.f32.mrb[4].mxu1  ;;  %v1527_v23 = vsel %vm646_vm1, %v1220_v52, -inf  ;;  %v2432_v27 = vpop.eup %2431  ;;  %v895_v26 = vadd.f32 1.0, %v2424_v60 }
 0x1d9   : > { %v1251_v12 = vadd.f32 %v1250_v63, %v1249_v59  ;;  %v1508_v13 = vmax.f32 %v1506_v15, %v1507_v0  ;;  %v1106_v14 = vpop.f32.mrb[5].mxu1  ;;  %v1271_v30 = vrot.slane %v1270_v20, 4  ;;  %v2896_v33 = vpop.eup %2433  ;;  %v1528_v36 = vrot.slane %v1527_v23, 4 }
 0x1da   : > { %v1266_v18 = vrot.slane %v1265_v2, 2  ;;  %v1523_v19 = vrot.slane %v1522_v4, 2  ;;  %v2892_v22 = vpop.f32.mrb[6].mxu1  ;;  %v1256_v37 = vsel %vm646_vm1, %v1218_v5, 0.0  ;;  %v742_v38 = vpop.xlane.xlu1 %741  ;;  %v900_v42 = vadd.f32 1.0, %v2428_v9 }
 0x1db   : > { %v1252_v28 = vrot.slane %v1251_v12, 2  ;;  %v1509_v29 = vrot.slane %v1508_v13, 2  ;;  %v2894_v31 = vpop.f32.mrb[7].mxu1  ;;  %v2436_v39 = vpop.eup %2435  ;;  %v2143_v43 = vmul.f32 -1.442695, %v774_v11  ;;  %v1272_v45 = vadd.f32 %v1271_v30, %v1270_v20 }
 0x1dc   : > { %v1267_v35 = vadd.f32 %v1266_v18, %v1265_v2  ;;  %v2899_v47 = vpop.eup %2437  ;;  %v1524_v50 = vmax.f32 %v1522_v4, %v1523_v19  ;;  %v1529_v53 = vmax.f32 %v1527_v23, %v1528_v36  ;;  %v1257_v54 = vrot.slane %v1256_v37, 4 }
 0x1dd   : > { %v1253_v44 = vadd.f32 %v1252_v28, %v1251_v12  ;;  %v2901_v55 = vpop.eup %2439  ;;  %v1510_v57 = vmax.f32 %v1508_v13, %v1509_v29  ;;  %v1273_v58 = vrot.slane %v1272_v45, 2  ;;  %v776_v59 = vadd.f32 %v2795_v7, %v742_v38 }
 0x1de   : > { %v1268_v49 = vrot.slane %v1267_v35, 1  ;;  %2447 = vrcp.f32 %v895_v26  ;;  %v1258_v60 = vadd.f32 %v1257_v54, %v1256_v37  ;;  %v2906_v63 = vpop.eup %2441  ;;  %v2908_v0 = vadd.f32 1.0, %v2432_v27 }
 0x1df   : > { %v1254_v10 = vrot.slane %v1253_v44, 1  ;;  %3295 = vst [vmem:[#allocation6_spill] sm:$0xff] %v2906_v63  ;;  %2449 = vrcp.f32 %v900_v42  ;;  %v1530_v4 = vrot.slane %v1529_v53, 2  ;;  %v1525_v9 = vrot.slane %v1524_v50, 1  ;;  %v2915_v18 = vpop.eup %2443 }
 0x1e0   : > { %v1269_v15 = vadd.f32 %v1268_v49, %v1267_v35  ;;  %v2904_v62 = vpop.f32.mrb[8].mxu1  ;;  %v1274_v11 = vadd.f32 %v1273_v58, %v1272_v45  ;;  %v1259_v12 = vrot.slane %v1258_v60, 2  ;;  %v1513_v13 = vsel %vm646_vm1, %v1218_v5, -inf  ;;  %3296 = vst [vmem:[#allocation7_spill] sm:$0xff] %v2915_v18  ;;  %v2924_v38 = vpop.eup %2445 }
 0x1e1   : > { %v1255_v2 = vadd.f32 %v1254_v10, %v1253_v44  ;;  %v2910_v52 = vpop.f32.mrb[9].mxu1  ;;  %2451 = vpow2.f32 %v2143_v43  ;;  %v1511_v19 = vrot.slane %v1510_v57, 1  ;;  %v1514_v20 = vrot.slane %v1513_v13, 4 }
 0x1e2   : > { %v2913_v7 = vpop.f32.mrb[10].mxu1  ;;  %v2145_v23 = vmul.f32 -1.442695, %v776_v59  ;;  %v2919_v27 = vadd.f32 1.0, %v2436_v39  ;;  %v1476_v28 = vmul.f32 0.125, %v1269_v15  ;;  %v1260_v29 = vadd.f32 %v1259_v12, %v1258_v60 }
 0x1e3   : > { %v2917_v26 = vpop.f32.mrb[11].mxu1  ;;  %v1115_v30 = vadd.f32 %v2885_v6, %v2856_v24  ;;  %v1474_v35 = vmul.f32 0.125, %v1255_v2  ;;  %v1531_v36 = vmax.f32 %v1529_v53, %v1530_v4  ;;  %v1515_v5 = vmax.f32 %v1513_v13, %v1514_v20 }
 0x1e4   : > { %v1107_v37 = vadd.f32 %v2856_v24, %v1106_v14  ;;  %v1526_v42 = vmax.f32 %v1524_v50, %v1525_v9  ;;  %v1275_v43 = vrot.slane %v1274_v11, 1  ;;  %v1261_v44 = vrot.slane %v1260_v29, 1 }
 0x1e5   : > { %v1223_v45 = vmul.f32 %v2830_v34, %v1115_v30  ;;  %v1512_v49 = vmax.f32 %v1510_v57, %v1511_v19  ;;  %v1516_v39 = vrot.slane %v1515_v5, 2  ;;  %2453 = vpow2.f32 %v2145_v23 }
 0x1e6   : > { %v1221_v54 = vmul.f32 %v2836_v48, %v1107_v37  ;;  %v1732_v10 = vadd.f32 %v1526_v42, %v1476_v28  ;;  %v1262_v58 = vadd.f32 %v1261_v44, %v1260_v29  ;;  %v1532_v15 = vrot.slane %v1531_v36, 1 }
 0x1e7   : > { %v1291_v6 = vsel %vm646_vm1, %v1223_v45, 0.0  ;;  %v1548_v53 = vsel %vm646_vm1, %v1223_v45, -inf  ;;  %v1730_v14 = vadd.f32 %v1512_v49, %v1474_v35  ;;  %v1517_v50 = vmax.f32 %v1515_v5, %v1516_v39 }
 0x1e8   : > { %v2930_v59 = vpop.f32.mrb[12].mxu1  ;;  %v1292_v60 = vrot.slane %v1291_v6, 4  ;;  %v2934_v34 = vpop.eup %2447  ;;  %v1276_v57 = vadd.f32 %v1275_v43, %v1274_v11  ;;  %v1549_v4 = vrot.slane %v1548_v53, 4  ;;  %v1277_v48 = vsel %vm646_vm1, %v1221_v54, 0.0 }
 0x1e9   : > { %v2932_v2 = vpop.f32.mrb[13].mxu1  ;;  %v1534_v9 = vsel %vm646_vm1, %v1221_v54, -inf  ;;  %v2940_v13 = vpop.eup %2449  ;;  %v1475_v19 = vmul.f32 0.125, %v1262_v58  ;;  %v1518_v20 = vrot.slane %v1517_v50, 1  ;;  %v1278_v28 = vrot.slane %v1277_v48, 4 }
 0x1ea   : > { %v2938_v12 = vpop.f32.mrb[14].mxu1  ;;  %3297 = vst [vmem:[#allocation8_spill] sm:$0xff] %v2940_v13  ;;  %v1293_v23 = vadd.f32 %v1292_v60, %v1291_v6  ;;  %v1550_v30 = vmax.f32 %v1548_v53, %v1549_v4  ;;  %v1535_v35 = vrot.slane %v1534_v9, 4  ;;  %v1118_v11 = vadd.f32 %v2892_v22, %v2856_v24 }
 0x1eb   : > { %v2942_v29 = vpop.f32.mrb[15].mxu1  ;;  %v1110_v5 = vadd.f32 %v2856_v24, %v2894_v31  ;;  %v2452_v37 = vpop.eup %2451  ;;  %v1762_v42 = vpack.c.bf16 %v1730_v14, %v1730_v14  ;;  %v1519_v43 = vmax.f32 %v1517_v50, %v1518_v20  ;;  %v1279_v45 = vadd.f32 %v1278_v28, %v1277_v48 }
 0x1ec   : > { %v1294_v44 = vrot.slane %v1293_v23, 2  ;;  %v1477_v49 = vmul.f32 0.125, %v1276_v57  ;;  %v1551_v39 = vrot.slane %v1550_v30, 2  ;;  %v1536_v54 = vmax.f32 %v1534_v9, %v1535_v35 }
 0x1ed   : > { %v1224_v58 = vmul.f32 %v2842_v3, %v1118_v11  ;;  %v1731_v6 = vadd.f32 %v1519_v43, %v1475_v19  ;;  %v1280_v53 = vrot.slane %v1279_v45, 2  ;;  %v1222_v4 = vmul.f32 %v2848_v16, %v1110_v5 }
 0x1ee   : > { %v1295_v60 = vadd.f32 %v1294_v44, %v1293_v23  ;;  %v1764_v13 = vpack.c.bf16 %v1732_v10, %v1732_v10  ;;  %v1533_v22 = vmax.f32 %v1531_v36, %v1532_v15  ;;  %v1552_v18 = vmax.f32 %v1550_v30, %v1551_v39 }
 0x1ef   : > { %v1298_v31 = vsel %vm646_vm1, %v1224_v58, 0.0  ;;  %v2454_v14 = vpop.eup %2453  ;;  %v1763_v50 = vpack.c.bf16 %v1731_v6, %v1731_v6  ;;  %v1537_v57 = vrot.slane %v1536_v54, 2  ;;  %v1837_v3 = vunpack.c.l.b16 %v1762_v42 }
 0x1f0   : > { %v2951_v63 = vpop.f32.mrb[16].mxu1  ;;  %v1296_v48 = vrot.slane %v1295_v60, 1  ;;  %v1299_v20 = vrot.slane %v1298_v31, 4  ;;  %v1281_v19 = vadd.f32 %v1280_v53, %v1279_v45  ;;  %v1555_v23 = vsel %vm646_vm1, %v1224_v58, -inf }
 0x1f1   : > { %v2953_v9 = vpop.f32.mrb[17].mxu1  ;;  %v1284_v16 = vsel %vm646_vm1, %v1222_v4, 0.0  ;;  %v1733_v36 = vadd.f32 %v1533_v22, %v1477_v49  ;;  %v1838_v15 = vunpack.c.l.b16 %v1763_v50  ;;  %v1553_v30 = vrot.slane %v1552_v18, 1 }
 0x1f2   : > { %v2957_v10 = vpop.f32.mrb[18].mxu1  ;;  %v1297_v28 = vadd.f32 %v1296_v48, %v1295_v60  ;;  %v1839_v11 = vunpack.c.l.b16 %v1764_v13  ;;  %v1300_v5 = vadd.f32 %v1299_v20, %v1298_v31  ;;  %v1556_v43 = vrot.slane %v1555_v23, 4 }
 0x1f3   : > { %v2959_v35 = vpop.f32.mrb[19].mxu1  ;;  %v1285_v44 = vrot.slane %v1284_v16, 4  ;;  %2455 = vrcp.f32 %v2908_v0  ;;  %v903_v42 = vadd.f32 1.0, %v2901_v55  ;;  %v1870_v45 = vsel %vm1869_vm2, %v1838_v15, %v1837_v3 }
 0x1f4   : > { %v1538_v39 = vmax.f32 %v1536_v54, %v1537_v57  ;;  %v901_v58 = vadd.f32 1.0, %v2924_v38  ;;  %v2966_v49 = vsel %vm1871_vm3, %v1839_v11, %v1870_v45  ;;  %v1480_v6 = vmul.f32 0.125, %v1297_v28 }
 0x1f5   : > { %3298 = vst [vmem:[#allocation9_spill] sm:$0xff] %v2966_v49  ;;  %v1282_v60 = vrot.slane %v1281_v19, 1  ;;  %2457 = vrcp.f32 %v2919_v27  ;;  %v902_v13 = vadd.f32 1.0, %v2452_v37  ;;  %v1765_v53 = vpack.c.bf16 %v1733_v36, %v1733_v36 }
 0x1f6   : > { %v1554_v22 = vmax.f32 %v1552_v18, %v1553_v30  ;;  %v1301_v31 = vrot.slane %v1300_v5, 2  ;;  %v1557_v50 = vmax.f32 %v1555_v23, %v1556_v43  ;;  %v1286_v0 = vadd.f32 %v1285_v44, %v1284_v16 }
 0x1f7   : > { %v1131_v55 = vadd.f32 %v2904_v62, %v2856_v24  ;;  %2459 = vrcp.f32 %v903_v42  ;;  %v1539_v38 = vrot.slane %v1538_v39, 1  ;;  %v1123_v54 = vadd.f32 %v2856_v24, %v2910_v52  ;;  %v2338_v62 = vld [vmem:[%s3290_s6 + $0x8] sm:$0xff]  }
 0x1f8   : > { %v2971_v48 = vpop.f32.mrb[20].mxu1  ;;  %2461 = vrcp.f32 %v901_v58  ;;  %v1736_v27 = vadd.f32 %v1554_v22, %v1480_v6  ;;  %v1283_v37 = vadd.f32 %v1282_v60, %v1281_v19  ;;  %v2983_v3 = vunpack.c.l.b16 %v1765_v53  ;;  %2287 = vmatprep.subr.bf16.mxu0 %v2338_v62 }
 0x1f9   : > { %v2975_v57 = vpop.f32.mrb[21].mxu1  ;;  %v1227_v18 = vmul.f32 %v2833_v41, %v1131_v55  ;;  %2463 = vrcp.f32 %v902_v13  ;;  %v1541_v23 = vsel %vm646_vm1, %v1222_v4, -inf  ;;  %v1225_v52 = vmul.f32 %v2839_v61, %v1123_v54  ;;  %2288 = vmatpush3.bf16.msra.mxu0 %v2338_v62 }
 0x1fa   : > { %v2978_v20 = vpop.f32.mrb[22].mxu1  ;;  %3299 = vst [vmem:[#allocation10_spill] sm:$0xff] %v2983_v3  ;;  %v1302_v36 = vadd.f32 %v1301_v31, %v1300_v5  ;;  %v1558_v15 = vrot.slane %v1557_v50, 2  ;;  %v1287_v19 = vrot.slane %v1286_v0, 2  ;;  %v904_v28 = vadd.f32 1.0, %v2454_v14 }
 0x1fb   : > { %v2987_v16 = vpop.f32.mrb[23].mxu1  ;;  %v1319_v41 = vsel %vm646_vm1, %v1227_v18, 0.0  ;;  %v1540_v30 = vmax.f32 %v1538_v39, %v1539_v38  ;;  %v1576_v43 = vsel %vm646_vm1, %v1227_v18, -inf  ;;  %v1768_v44 = vpack.c.bf16 %v1736_v27, %v1736_v27 }
 0x1fc   : > { %v1320_v11 = vrot.slane %v1319_v41, 4  ;;  %v1478_v42 = vmul.f32 0.125, %v1283_v37  ;;  %v1542_v45 = vrot.slane %v1541_v23, 4  ;;  %v1577_v4 = vrot.slane %v1576_v43, 4 }
 0x1fd   : > { %v2991_v58 = vpop.eup %2455  ;;  %v1305_v5 = vsel %vm646_vm1, %v1225_v52, 0.0  ;;  %v1562_v6 = vsel %vm646_vm1, %v1225_v52, -inf  ;;  %v1134_v60 = vadd.f32 %v2913_v7, %v2856_v24  ;;  %v1303_v14 = vrot.slane %v1302_v36, 1 }
 0x1fe   : > { %v1321_v61 = vadd.f32 %v1320_v11, %v1319_v41  ;;  %v1559_v39 = vmax.f32 %v1557_v50, %v1558_v15  ;;  %v1288_v13 = vadd.f32 %v1287_v19, %v1286_v0  ;;  %v1578_v53 = vmax.f32 %v1576_v43, %v1577_v4 }
 0x1ff   : > { %v2999_v31 = vpop.eup %2457  ;;  %v1306_v38 = vrot.slane %v1305_v5, 4  ;;  %v1563_v54 = vrot.slane %v1562_v6, 4  ;;  %v1228_v27 = vmul.f32 %v2845_v8, %v1134_v60  ;;  %v3004_v18 = vadd.f32 %v1540_v30, %v1478_v42 }
 0x200   : > { %v2997_v22 = vpop.f32.mrb[24].mxu1  ;;  %3300 = vst [vmem:[#allocation11_spill] sm:$0xff] %v2999_v31  ;;  %v1322_v55 = vrot.slane %v1321_v61, 2  ;;  %v1543_v62 = vmax.f32 %v1541_v23, %v1542_v45  ;;  %v1579_v52 = vrot.slane %v1578_v53, 2  ;;  %v1126_v7 = vadd.f32 %v2856_v24, %v2917_v26 }
 0x201   : > { %v3002_v37 = vpop.f32.mrb[25].mxu1  ;;  %v3010_v0 = vpop.eup %2459  ;;  %v1307_v19 = vadd.f32 %v1306_v38, %v1305_v5  ;;  %v1564_v41 = vmax.f32 %v1562_v6, %v1563_v54  ;;  %v1326_v11 = vsel %vm646_vm1, %v1228_v27, 0.0  ;;  %v1304_v30 = vadd.f32 %v1303_v14, %v1302_v36 }
 0x202   : > { %v3008_v50 = vpop.f32.mrb[26].mxu1  ;;  %3301 = vst [vmem:[#allocation12_spill] sm:$0xff] %v3010_v0  ;;  %v1323_v15 = vadd.f32 %v1322_v55, %v1321_v61  ;;  %v3015_v8 = vpop.eup %2461  ;;  %v1560_v42 = vrot.slane %v1559_v39, 1  ;;  %v1289_v23 = vrot.slane %v1288_v13, 1  ;;  %v1327_v45 = vrot.slane %v1326_v11, 4 }
 0x203   : > { %v3013_v43 = vpop.f32.mrb[27].mxu1  ;;  %3303 = vst [vmem:[#allocation14_spill] sm:$0xff] %v3015_v8  ;;  %v3017_v4 = vpop.eup %2463  ;;  %v1308_v60 = vrot.slane %v1307_v19, 2  ;;  %v1565_v3 = vrot.slane %v1564_v41, 2  ;;  %v1583_v49 = vsel %vm646_vm1, %v1228_v27, -inf  ;;  %2465 = vrcp.f32 %v904_v28 }
 0x204   : > { %3302 = vst [vmem:[#allocation13_spill] sm:$0xff] %v3013_v43  ;;  %3304 = vst [vmem:[#allocation15_spill] sm:$0xff] %v3017_v4  ;;  %v1324_v26 = vrot.slane %v1323_v15, 1  ;;  %v3020_v61 = vunpack.c.l.b16 %v1768_v44  ;;  %v1580_v5 = vmax.f32 %v1578_v53, %v1579_v52  ;;  %v1328_v6 = vadd.f32 %v1327_v45, %v1326_v11 }
 0x205   : > { %v1309_v55 = vadd.f32 %v1308_v60, %v1307_v19  ;;  %v1566_v38 = vmax.f32 %v1564_v41, %v1565_v3  ;;  %v1584_v54 = vrot.slane %v1583_v49, 4  ;;  %v1226_v36 = vmul.f32 %v2851_v21, %v1126_v7 }
 0x206   : > { %3305 = vst [vmem:[#allocation16_spill] sm:$0xff] %v3020_v61  ;;  %v1481_v8 = vmul.f32 0.125, %v1304_v30  ;;  %v1544_v4 = vrot.slane %v1543_v62, 2  ;;  %v1325_v0 = vadd.f32 %v1324_v26, %v1323_v15  ;;  %v1561_v43 = vmax.f32 %v1559_v39, %v1560_v42 }
 0x207   : > { %v3027_v27 = vadd.f32 %v1289_v23, %v1288_v13  ;;  %v1310_v28 = vrot.slane %v1309_v55, 1  ;;  %v1312_v44 = vsel %vm646_vm1, %v1226_v36, 0.0  ;;  %v1581_v3 = vrot.slane %v1580_v5, 1 }
 0x208   : > { %v3025_v31 = vpop.f32.mrb[28].mxu1  ;;  %v1329_v52 = vrot.slane %v1328_v6, 2  ;;  %v1313_v19 = vrot.slane %v1312_v44, 4  ;;  %v1569_v21 = vsel %vm646_vm1, %v1226_v36, -inf  ;;  %v1567_v11 = vrot.slane %v1566_v38, 1 }
 0x209   : > { %v3030_v53 = vpop.f32.mrb[29].mxu1  ;;  %v1311_v41 = vadd.f32 %v1310_v28, %v1309_v55  ;;  %v1585_v15 = vmax.f32 %v1583_v49, %v1584_v54  ;;  %v1570_v30 = vrot.slane %v1569_v21, 4  ;;  %v3037_v39 = vmax.f32 %v1543_v62, %v1544_v4 }
 0x20a   : > { %v3033_v7 = vpop.f32.mrb[30].mxu1  ;;  %v1484_v13 = vmul.f32 0.125, %v1325_v0  ;;  %v1314_v42 = vadd.f32 %v1313_v19, %v1312_v44  ;;  %v1147_v23 = vadd.f32 %v2930_v59, %v2856_v24  ;;  %v3041_v26 = vadd.f32 %v1561_v43, %v1481_v8 }
 0x20b   : > { %v3035_v45 = vpop.f32.mrb[31].mxu1  ;;  %v1482_v60 = vmul.f32 0.125, %v1311_v41  ;;  %v1571_v14 = vmax.f32 %v1569_v21, %v1570_v30  ;;  %v1139_v36 = vadd.f32 %v2856_v24, %v2932_v2  ;;  %v1582_v55 = vmax.f32 %v1580_v5, %v1581_v3 }
 0x20c   : > { %3306 = vst [vmem:[#allocation17_spill] sm:$0xff] %v3035_v45  ;;  %v1330_v28 = vadd.f32 %v1329_v52, %v1328_v6  ;;  %v1315_v49 = vrot.slane %v1314_v42, 2  ;;  %v1231_v54 = vmul.f32 %v2858_v25, %v1147_v23  ;;  %v1568_v45 = vmax.f32 %v1566_v38, %v1567_v11 }
 0x20d   : > { %v1586_v62 = vrot.slane %v1585_v15, 2  ;;  %v1572_v4 = vrot.slane %v1571_v14, 2  ;;  %v1229_v0 = vmul.f32 %v2864_v40, %v1139_v36  ;;  %v3047_v44 = vpop.eup %2465  ;;  %v1546_v59 = vrot.slane %v3037_v39, 1 }
 0x20e   : > { %3307 = vst [vmem:[#allocation18_spill] sm:$0xff] %v3047_v44  ;;  %v1740_v43 = vadd.f32 %v1582_v55, %v1484_v13  ;;  %v1316_v8 = vadd.f32 %v1315_v49, %v1314_v42  ;;  %v1347_v19 = vsel %vm646_vm1, %v1231_v54, 0.0  ;;  %v1738_v21 = vadd.f32 %v1568_v45, %v1482_v60 }
 0x20f   : > { %v1573_v2 = vmax.f32 %v1571_v14, %v1572_v4  ;;  %v1348_v5 = vrot.slane %v1347_v19, 4  ;;  %v1604_v6 = vsel %vm646_vm1, %v1231_v54, -inf  ;;  %v1331_v3 = vrot.slane %v1330_v28, 1 }
 0x210   : > { %v1317_v25 = vrot.slane %v1316_v8, 1  ;;  %v1605_v38 = vrot.slane %v1604_v6, 4  ;;  %v1333_v52 = vsel %vm646_vm1, %v1229_v0, 0.0  ;;  %v1587_v41 = vmax.f32 %v1585_v15, %v1586_v62 }
 0x211   : > { %v1574_v40 = vrot.slane %v1573_v2, 1  ;;  %v1349_v11 = vadd.f32 %v1348_v5, %v1347_v19  ;;  %v1334_v30 = vrot.slane %v1333_v52, 4  ;;  %v1772_v23 = vpack.c.bf16 %v1740_v43, %v1740_v43 }
 0x212   : > { %v1318_v36 = vadd.f32 %v1317_v25, %v1316_v8  ;;  %v1606_v13 = vmax.f32 %v1604_v6, %v1605_v38  ;;  %v1590_v42 = vsel %vm646_vm1, %v1229_v0, -inf  ;;  %v1770_v55 = vpack.c.bf16 %v1738_v21, %v1738_v21 }
 0x213   : > { %v1350_v45 = vrot.slane %v1349_v11, 2  ;;  %v1335_v14 = vadd.f32 %v1334_v30, %v1333_v52  ;;  %v1591_v60 = vrot.slane %v1590_v42, 4  ;;  %v1575_v54 = vmax.f32 %v1573_v2, %v1574_v40 }
 0x214   : > { %v1483_v49 = vmul.f32 0.125, %v1318_v36  ;;  %v1607_v4 = vrot.slane %v1606_v13, 2  ;;  %v1150_v61 = vadd.f32 %v2938_v12, %v2856_v24  ;;  %v1142_v43 = vadd.f32 %v2856_v24, %v2942_v29 }
 0x215   : > { %v1351_v44 = vadd.f32 %v1350_v45, %v1349_v11  ;;  %v1336_v15 = vrot.slane %v1335_v14, 2  ;;  %v1592_v62 = vmax.f32 %v1590_v42, %v1591_v60  ;;  %v1332_v8 = vadd.f32 %v1331_v3, %v1330_v28 }
 0x216   : > { %v1588_v19 = vrot.slane %v1587_v41, 1  ;;  %v1739_v5 = vadd.f32 %v1575_v54, %v1483_v49  ;;  %v1232_v0 = vmul.f32 %v2873_v51, %v1150_v61  ;;  %v1230_v2 = vmul.f32 %v2881_v1, %v1142_v43 }
 0x217   : > { %v1352_v21 = vrot.slane %v1351_v44, 1  ;;  %v1337_v6 = vadd.f32 %v1336_v15, %v1335_v14  ;;  %v1593_v25 = vrot.slane %v1592_v62, 2  ;;  %v1608_v52 = vmax.f32 %v1606_v13, %v1607_v4 }
 0x218   : > { %v1771_v38 = vpack.c.bf16 %v1739_v5, %v1739_v5  ;;  %v1354_v12 = vsel %vm646_vm1, %v1232_v0, 0.0  ;;  %v1611_v40 = vsel %vm646_vm1, %v1232_v0, -inf  ;;  %v1845_v11 = vunpack.c.l.b16 %v1770_v55 }
 0x219   : > { %v1353_v30 = vadd.f32 %v1352_v21, %v1351_v44  ;;  %v1338_v36 = vrot.slane %v1337_v6, 1  ;;  %v1355_v29 = vrot.slane %v1354_v12, 4  ;;  %v1594_v3 = vmax.f32 %v1592_v62, %v1593_v25 }
 0x21a   : > { %v1846_v28 = vunpack.c.l.b16 %v1771_v38  ;;  %v1612_v42 = vrot.slane %v1611_v40, 4  ;;  %v1340_v51 = vsel %vm646_vm1, %v1230_v2, 0.0  ;;  %v1479_v61 = vmul.f32 0.125, %v3027_v27 }
 0x21b   : > { %v1847_v45 = vunpack.c.l.b16 %v1772_v23  ;;  %v1485_v14 = vmul.f32 0.125, %v1332_v8  ;;  %v1163_v1 = vadd.f32 %v2951_v63, %v2856_v24  ;;  %v1609_v60 = vrot.slane %v1608_v52, 1 }
 0x21c   : > { %v1883_v13 = vsel %vm1869_vm2, %v1846_v28, %v1845_v11  ;;  %v1339_v49 = vadd.f32 %v1338_v36, %v1337_v6  ;;  %v1356_v55 = vadd.f32 %v1355_v29, %v1354_v12  ;;  %v1769_v44 = vpack.c.bf16 %v3041_v26, %v3041_v26 }
 0x21d   : > { %v1547_v54 = vmax.f32 %v3037_v39, %v1546_v59  ;;  %v3071_v4 = vsel %vm1871_vm3, %v1847_v45, %v1883_v13  ;;  %v1341_v15 = vrot.slane %v1340_v51, 4  ;;  %v1589_v27 = vmax.f32 %v1587_v41, %v1588_v19 }
 0x21e   : > { %v1488_v23 = vmul.f32 0.125, %v1353_v30  ;;  %v1595_v62 = vrot.slane %v1594_v3, 1  ;;  %v1613_v43 = vmax.f32 %v1611_v40, %v1612_v42  ;;  %v1597_v63 = vsel %vm646_vm1, %v1230_v2, -inf }
 0x21f   : > { %v1735_v8 = vadd.f32 %v1547_v54, %v1479_v61  ;;  %v1235_v5 = vmul.f32 %v2860_v32, %v1163_v1  ;;  %v1155_v0 = vadd.f32 %v2856_v24, %v2953_v9  ;;  %v1741_v21 = vadd.f32 %v1589_v27, %v1485_v14 }
 0x220   : > { %v1610_v26 = vmax.f32 %v1608_v52, %v1609_v60  ;;  %v1486_v6 = vmul.f32 0.125, %v1339_v49  ;;  %v1357_v39 = vrot.slane %v1356_v55, 2  ;;  %v3308_v59 = vpack.c.bf16 %v3004_v18, %v3004_v18 }
 0x221   : > { %v1342_v41 = vadd.f32 %v1341_v15, %v1340_v51  ;;  %v1375_v19 = vsel %vm646_vm1, %v1235_v5, 0.0  ;;  %v1632_v38 = vsel %vm646_vm1, %v1235_v5, -inf  ;;  %v1596_v12 = vmax.f32 %v1594_v3, %v1595_v62 }
 0x222   : > { %v3080_v25 = vunpack.c.l.b16 %v3308_v59  ;;  %v1744_v2 = vadd.f32 %v1610_v26, %v1488_v23  ;;  %v1614_v32 = vrot.slane %v1613_v43, 2  ;;  %v1598_v40 = vrot.slane %v1597_v63, 4 }
 0x223   : > { %v3084_v11 = vunpack.c.l.b16 %v1769_v44  ;;  %v1376_v9 = vrot.slane %v1375_v19, 4  ;;  %v1633_v52 = vrot.slane %v1632_v38, 4  ;;  %v1233_v30 = vmul.f32 %v2868_v46, %v1155_v0 }
 0x224   : > { %v1767_v36 = vpack.c.bf16 %v1735_v8, %v1735_v8  ;;  %v1773_v29 = vpack.c.bf16 %v1741_v21, %v1741_v21  ;;  %v1742_v18 = vadd.f32 %v1596_v12, %v1486_v6  ;;  %v1358_v28 = vadd.f32 %v1357_v39, %v1356_v55 }
 0x225   : > { %v1343_v42 = vrot.slane %v1342_v41, 2  ;;  %v1377_v51 = vadd.f32 %v1376_v9, %v1375_v19  ;;  %v1361_v61 = vsel %vm646_vm1, %v1233_v30, 0.0  ;;  %v1618_v45 = vsel %vm646_vm1, %v1233_v30, -inf }
 0x226   : > { %v1776_v14 = vpack.c.bf16 %v1744_v2, %v1744_v2  ;;  %v1615_v3 = vmax.f32 %v1613_v43, %v1614_v32  ;;  %v1599_v1 = vmax.f32 %v1597_v63, %v1598_v40  ;;  %v1362_v13 = vrot.slane %v1361_v61, 4 }
 0x227   : > { %v1378_v60 = vrot.slane %v1377_v51, 2  ;;  %v1634_v49 = vmax.f32 %v1632_v38, %v1633_v52  ;;  %v1619_v44 = vrot.slane %v1618_v45, 4  ;;  %v1166_v46 = vadd.f32 %v2957_v10, %v2856_v24 }
 0x228   : > { %v3091_v54 = vunpack.c.l.b16 %v1767_v36  ;;  %v1774_v15 = vpack.c.bf16 %v1742_v18, %v1742_v18  ;;  %v1359_v55 = vrot.slane %v1358_v28, 1  ;;  %v1363_v27 = vadd.f32 %v1362_v13, %v1361_v61 }
 0x229   : > { %v1344_v23 = vadd.f32 %v1343_v42, %v1342_v41  ;;  %v1379_v62 = vadd.f32 %v1378_v60, %v1377_v51  ;;  %v1620_v8 = vmax.f32 %v1618_v45, %v1619_v44  ;;  %v1236_v5 = vmul.f32 %v2877_v56, %v1166_v46 }
 0x22a   : > { %v3094_v0 = vunpack.c.l.b16 %v1773_v29  ;;  %v3096_v43 = vunpack.c.l.b16 %v1776_v14  ;;  %v1616_v63 = vrot.slane %v1615_v3, 1  ;;  %v1364_v21 = vrot.slane %v1363_v27, 2 }
 0x22b   : > { %v1600_v26 = vrot.slane %v1599_v1, 2  ;;  %v1635_v6 = vrot.slane %v1634_v49, 2  ;;  %v1382_v10 = vsel %vm646_vm1, %v1236_v5, 0.0  ;;  %v1158_v39 = vadd.f32 %v2856_v24, %v2959_v35 }
 0x22c   : > { %v3101_v59 = vunpack.c.l.b16 %v1774_v15  ;;  %v1365_v41 = vadd.f32 %v1364_v21, %v1363_v27  ;;  %v1621_v19 = vrot.slane %v1620_v8, 2  ;;  %v1383_v38 = vrot.slane %v1382_v10, 4 }
 0x22d   : > { %v1360_v2 = vadd.f32 %v1359_v55, %v1358_v28  ;;  %v1345_v56 = vrot.slane %v1344_v23, 1  ;;  %v1380_v12 = vrot.slane %v1379_v62, 1  ;;  %v1639_v32 = vsel %vm646_vm1, %v1236_v5, -inf }
 0x22e   : > { %v3104_v40 = vmax.f32 %v1615_v3, %v1616_v63  ;;  %v1366_v9 = vrot.slane %v1365_v41, 1  ;;  %v1384_v52 = vadd.f32 %v1383_v38, %v1382_v10  ;;  %v1640_v30 = vrot.slane %v1639_v32, 4 }
 0x22f   : > { %v1601_v36 = vmax.f32 %v1599_v1, %v1600_v26  ;;  %v1636_v29 = vmax.f32 %v1634_v49, %v1635_v6  ;;  %v1234_v18 = vmul.f32 %v2896_v33, %v1158_v39  ;;  %v1179_v35 = vadd.f32 %v2971_v48, %v2856_v24 }
 0x230   : > { %v1622_v42 = vmax.f32 %v1620_v8, %v1621_v19  ;;  %v1385_v51 = vrot.slane %v1384_v52, 2  ;;  %v1641_v61 = vmax.f32 %v1639_v32, %v1640_v30  ;;  %v1171_v28 = vadd.f32 %v2856_v24, %v2975_v57 }
 0x231   : > { %v1346_v45 = vadd.f32 %v1345_v56, %v1344_v23  ;;  %v1381_v14 = vadd.f32 %v1380_v12, %v1379_v62  ;;  %v1368_v3 = vsel %vm646_vm1, %v1234_v18, 0.0  ;;  %v1625_v13 = vsel %vm646_vm1, %v1234_v18, -inf }
 0x232   : > { %v1367_v60 = vadd.f32 %v1366_v9, %v1365_v41  ;;  %v1386_v1 = vadd.f32 %v1385_v51, %v1384_v52  ;;  %v1642_v49 = vrot.slane %v1641_v61, 2  ;;  %v1369_v44 = vrot.slane %v1368_v3, 4 }
 0x233   : > { %v1637_v33 = vrot.slane %v1636_v29, 1  ;;  %v1626_v46 = vrot.slane %v1625_v13, 4  ;;  %v1239_v48 = vmul.f32 %v2934_v34, %v1179_v35  ;;  %v1237_v15 = vmul.f32 %v2888_v17, %v1171_v28 }
 0x234   : > { %v1623_v55 = vrot.slane %v1622_v42, 1  ;;  %v1387_v27 = vrot.slane %v1386_v1, 1  ;;  %v1643_v8 = vmax.f32 %v1641_v61, %v1642_v49  ;;  %v1370_v57 = vadd.f32 %v1369_v44, %v1368_v3 }
 0x235   : > { %v1492_v23 = vmul.f32 0.125, %v1381_v14  ;;  %v1627_v62 = vmax.f32 %v1625_v13, %v1626_v46  ;;  %v1403_v5 = vsel %vm646_vm1, %v1239_v48, 0.0  ;;  %v1660_v63 = vsel %vm646_vm1, %v1239_v48, -inf }
 0x236   : > { %v1490_v21 = vmul.f32 0.125, %v1367_v60  ;;  %v1388_v26 = vadd.f32 %v1387_v27, %v1386_v1  ;;  %v1644_v6 = vrot.slane %v1643_v8, 1  ;;  %v1371_v10 = vrot.slane %v1370_v57, 2 }
 0x237   : > { %v1638_v39 = vmax.f32 %v1636_v29, %v1637_v33  ;;  %v1628_v41 = vrot.slane %v1627_v62, 2  ;;  %v1404_v19 = vrot.slane %v1403_v5, 4  ;;  %v1389_v34 = vsel %vm646_vm1, %v1237_v15, 0.0 }
 0x238   : > { %v1602_v17 = vrot.slane %v1601_v36, 1  ;;  %v1624_v38 = vmax.f32 %v1622_v42, %v1623_v55  ;;  %v1372_v56 = vadd.f32 %v1371_v10, %v1370_v57  ;;  %v1661_v12 = vrot.slane %v1660_v63, 4 }
 0x239   : > { %v1748_v32 = vadd.f32 %v1638_v39, %v1492_v23  ;;  %v1493_v9 = vmul.f32 0.125, %v1388_v26  ;;  %v1629_v52 = vmax.f32 %v1627_v62, %v1628_v41  ;;  %v1390_v30 = vrot.slane %v1389_v34, 4 }
 0x23a   : > { %v1746_v18 = vadd.f32 %v1624_v38, %v1490_v21  ;;  %v1645_v35 = vmax.f32 %v1643_v8, %v1644_v6  ;;  %v1373_v51 = vrot.slane %v1372_v56, 1  ;;  %v1646_v61 = vsel %vm646_vm1, %v1237_v15, -inf }
 0x23b   : > { %v1630_v28 = vrot.slane %v1629_v52, 1  ;;  %v1405_v14 = vadd.f32 %v1404_v19, %v1403_v5  ;;  %v1391_v29 = vadd.f32 %v1390_v30, %v1389_v34  ;;  %v1182_v3 = vadd.f32 %v2978_v20, %v2856_v24 }
 0x23c   : > { %v1489_v13 = vmul.f32 0.125, %v1360_v2  ;;  %v1374_v60 = vadd.f32 %v1373_v51, %v1372_v56  ;;  %v1662_v42 = vmax.f32 %v1660_v63, %v1661_v12  ;;  %v1647_v1 = vrot.slane %v1646_v61, 4  ;;  %v3125_v2 = vld [vmem:[%s3289_s5] ss:$0 sm:$0xff] }
 0x23d   : > { %v1487_v49 = vmul.f32 0.125, %v1346_v45  ;;  %v1603_v44 = vmax.f32 %v1601_v36, %v1602_v17  ;;  %v1749_v33 = vadd.f32 %v1645_v35, %v1493_v9  ;;  %v1392_v46 = vrot.slane %v1391_v29, 2 }
 0x23e   : > { %v1780_v48 = vpack.c.bf16 %v1748_v32, %v1748_v32  ;;  %v1491_v55 = vmul.f32 0.125, %v1374_v60  ;;  %v1631_v27 = vmax.f32 %v1629_v52, %v1630_v28  ;;  %v1648_v8 = vmax.f32 %v1646_v61, %v1647_v1 }
 0x23f   : > { %v1778_v57 = vpack.c.bf16 %v1746_v18, %v1746_v18  ;;  %v1406_v15 = vrot.slane %v1405_v14, 2  ;;  %v1393_v23 = vadd.f32 %v1392_v46, %v1391_v29  ;;  %v1240_v62 = vmul.f32 %v2991_v58, %v1182_v3 }
 0x240   : > { %v1747_v5 = vadd.f32 %v1631_v27, %v1491_v55  ;;  %v1663_v24 = vrot.slane %v1662_v42, 2  ;;  %v1649_v20 = vrot.slane %v1648_v8, 2  ;;  %v1174_v36 = vadd.f32 %v3125_v2, %v2987_v16 }
 0x241   : > { %v3130_v45 = vadd.f32 %v3104_v40, %v1489_v13  ;;  %v3132_v63 = vadd.f32 %v1603_v44, %v1487_v49  ;;  %v1781_v21 = vpack.c.bf16 %v1749_v33, %v1749_v33  ;;  %v1394_v26 = vrot.slane %v1393_v23, 1  ;;  %v3309_v49 = vld [vmem:[#allocation6_spill] sm:$0xff] }
 0x242   : > { %v1855_v6 = vunpack.c.l.b16 %v1780_v48  ;;  %v1779_v58 = vpack.c.bf16 %v1747_v5, %v1747_v5  ;;  %v1650_v10 = vmax.f32 %v1648_v8, %v1649_v20  ;;  %v1238_v39 = vmul.f32 %v2899_v47, %v1174_v36 }
 0x243   : > { %v1853_v41 = vunpack.c.l.b16 %v1778_v57  ;;  %v1407_v19 = vadd.f32 %v1406_v15, %v1405_v14  ;;  %v1395_v34 = vadd.f32 %v1394_v26, %v1393_v23  ;;  %v1410_v17 = vsel %vm646_vm1, %v1240_v62, 0.0 }
 0x244   : > { %v1854_v38 = vunpack.c.l.b16 %v1779_v58  ;;  %v1664_v56 = vmax.f32 %v1662_v42, %v1663_v24  ;;  %v1651_v16 = vrot.slane %v1650_v10, 1  ;;  %v1396_v40 = vsel %vm646_vm1, %v1238_v39, 0.0 }
 0x245   : > { %v1856_v12 = vunpack.c.l.b16 %v1781_v21  ;;  %v1494_v32 = vmul.f32 0.125, %v1395_v34  ;;  %v1397_v9 = vrot.slane %v1396_v40, 4  ;;  %v1195_v52 = vadd.f32 %v3125_v2, %v2997_v22  ;;  %v3310_v21 = vld [vmem:[#allocation7_spill] sm:$0xff] }
 0x246   : > { %v1890_v30 = vsel %vm1869_vm2, %v1854_v38, %v1853_v41  ;;  %v1652_v47 = vmax.f32 %v1650_v10, %v1651_v16  ;;  %v1411_v18 = vrot.slane %v1410_v17, 4  ;;  %v1653_v35 = vsel %vm646_vm1, %v1238_v39, -inf }
 0x247   : > { %v1777_v51 = vpack.c.bf16 %v3130_v45, %v3130_v45  ;;  %v1891_v61 = vsel %vm1871_vm3, %v1855_v6, %v1890_v30  ;;  %v1408_v28 = vrot.slane %v1407_v19, 1  ;;  %v1398_v14 = vadd.f32 %v1397_v9, %v1396_v40 }
 0x248   : > { %v1775_v29 = vpack.c.bf16 %v3132_v63, %v3132_v63  ;;  %v1750_v3 = vadd.f32 %v1652_v47, %v1494_v32  ;;  %v1892_v13 = vsel %vm1873_vm4, %v1856_v12, %v1891_v61  ;;  %v1654_v22 = vrot.slane %v1653_v35, 4 }
 0x249   : > { %v1665_v60 = vrot.slane %v1664_v56, 1  ;;  %v1667_v42 = vsel %vm646_vm1, %v1240_v62, -inf  ;;  %v1399_v1 = vrot.slane %v1398_v14, 2  ;;  %v1243_v44 = vmul.f32 %v3309_v49, %v1195_v52 }
 0x24a   : > { %v1782_v33 = vpack.c.bf16 %v1750_v3, %v1750_v3  ;;  %v1412_v46 = vadd.f32 %v1411_v18, %v1410_v17  ;;  %v1655_v48 = vmax.f32 %v1653_v35, %v1654_v22  ;;  %v1187_v55 = vadd.f32 %v3125_v2, %v3002_v37 }
 0x24b   : > { %v1409_v27 = vadd.f32 %v1408_v28, %v1407_v19  ;;  %v1400_v8 = vadd.f32 %v1399_v1, %v1398_v14  ;;  %v1431_v57 = vsel %vm646_vm1, %v1243_v44, 0.0  ;;  %v1688_v15 = vsel %vm646_vm1, %v1243_v44, -inf }
 0x24c   : > { %v1857_v23 = vunpack.c.l.b16 %v1782_v33  ;;  %v1668_v5 = vrot.slane %v1667_v42, 4  ;;  %v1656_v24 = vrot.slane %v1655_v48, 2  ;;  %v1432_v20 = vrot.slane %v1431_v57, 4 }
 0x24d   : > { %v1401_v62 = vrot.slane %v1400_v8, 1  ;;  %v1689_v36 = vrot.slane %v1688_v15, 4  ;;  %v1241_v26 = vmul.f32 %v3310_v21, %v1187_v55  ;;  %v1198_v6 = vadd.f32 %v3125_v2, %v3008_v50  ;;  %v3311_v50 = vld [vmem:[#allocation8_spill] sm:$0xff]  ;;  %v3312_v55 = vld [vmem:[#allocation13_spill] sm:$0xff] }
 0x24e   : > { %v1893_v58 = vsel %vm1875_vm5, %v1857_v23, %v1892_v13  ;;  %v1413_v37 = vrot.slane %v1412_v46, 2  ;;  %v1657_v10 = vmax.f32 %v1655_v48, %v1656_v24  ;;  %v1433_v39 = vadd.f32 %v1432_v20, %v1431_v57  ;;  %v3313_v24 = vld [vmem:[#allocation11_spill] sm:$0xff] }
 0x24f   : > { %v1402_v41 = vadd.f32 %v1401_v62, %v1400_v8  ;;  %v1690_v19 = vmax.f32 %v1688_v15, %v1689_v36  ;;  %v1417_v34 = vsel %vm646_vm1, %v1241_v26, 0.0  ;;  %v1674_v17 = vsel %vm646_vm1, %v1241_v26, -inf }
 0x250   : > { %v1669_v38 = vmax.f32 %v1667_v42, %v1668_v5  ;;  %v1658_v16 = vrot.slane %v1657_v10, 1  ;;  %v1434_v40 = vrot.slane %v1433_v39, 2  ;;  %v1418_v12 = vrot.slane %v1417_v34, 4 }
 0x251   : > { %v1495_v32 = vmul.f32 0.125, %v1402_v41  ;;  %v1691_v9 = vrot.slane %v1690_v19, 2  ;;  %v1675_v52 = vrot.slane %v1674_v17, 4  ;;  %v1244_v30 = vmul.f32 %v3311_v50, %v1198_v6 }
 0x252   : > { %v1666_v47 = vmax.f32 %v1664_v56, %v1665_v60  ;;  %v1659_v18 = vmax.f32 %v1657_v10, %v1658_v16  ;;  %v1435_v35 = vadd.f32 %v1434_v40, %v1433_v39  ;;  %v1419_v61 = vadd.f32 %v1418_v12, %v1417_v34 }
 0x253   : > { %v1414_v28 = vadd.f32 %v1413_v37, %v1412_v46  ;;  %v1676_v14 = vmax.f32 %v1674_v17, %v1675_v52  ;;  %v1438_v3 = vsel %vm646_vm1, %v1244_v30, 0.0  ;;  %v1695_v13 = vsel %vm646_vm1, %v1244_v30, -inf }
 0x254   : > { %v1751_v22 = vadd.f32 %v1659_v18, %v1495_v32  ;;  %v1436_v42 = vrot.slane %v1435_v35, 1  ;;  %v1420_v1 = vrot.slane %v1419_v61, 2  ;;  %v1439_v49 = vrot.slane %v1438_v3, 4 }
 0x255   : > { %v1670_v44 = vrot.slane %v1669_v38, 2  ;;  %v1692_v33 = vmax.f32 %v1690_v19, %v1691_v9  ;;  %v1696_v48 = vrot.slane %v1695_v13, 4  ;;  %v1190_v8 = vadd.f32 %v3125_v2, %v3312_v55 }
 0x256   : > { %v1783_v56 = vpack.c.bf16 %v1751_v22, %v1751_v22  ;;  %v1421_v60 = vadd.f32 %v1420_v1, %v1419_v61  ;;  %v1677_v57 = vrot.slane %v1676_v14, 2  ;;  %v1440_v15 = vadd.f32 %v1439_v49, %v1438_v3 }
 0x257   : > { %v1496_v46 = vmul.f32 0.125, %v1409_v27  ;;  %v1415_v23 = vrot.slane %v1414_v28, 1  ;;  %v1697_v5 = vmax.f32 %v1695_v13, %v1696_v48  ;;  %v1242_v20 = vmul.f32 %v3313_v24, %v1190_v8  ;;  %v3314_v13 = vld [vmem:[#allocation12_spill] sm:$0xff] }
 0x258   : > { %v1858_v62 = vunpack.c.l.b16 %v1783_v56  ;;  %v1437_v36 = vadd.f32 %v1436_v42, %v1435_v35  ;;  %v1422_v21 = vrot.slane %v1421_v60, 1  ;;  %v1441_v26 = vrot.slane %v1440_v15, 2  ;;  %v3315_v42 = vld [vmem:[#allocation14_spill] sm:$0xff] }
 0x259   : > { %v1671_v6 = vmax.f32 %v1669_v38, %v1670_v44  ;;  %v1698_v37 = vrot.slane %v1697_v5, 2  ;;  %v1424_v10 = vsel %vm646_vm1, %v1242_v20, 0.0  ;;  %v1681_v39 = vsel %vm646_vm1, %v1242_v20, -inf }
 0x25a   : > { %v3168_v41 = vsel %vm1877_vm6, %v1858_v62, %v1893_v58  ;;  %v1693_v19 = vrot.slane %v1692_v33, 1  ;;  %v1678_v34 = vmax.f32 %v1676_v14, %v1677_v57  ;;  %v1442_v27 = vadd.f32 %v1441_v26, %v1440_v15 }
 0x25b   : > { %v1752_v17 = vadd.f32 %v1666_v47, %v1496_v46  ;;  %v1416_v16 = vadd.f32 %v1415_v23, %v1414_v28  ;;  %v1425_v40 = vrot.slane %v1424_v10, 4  ;;  %v1682_v12 = vrot.slane %v1681_v39, 4 }
 0x25c   : > { %v1500_v32 = vmul.f32 0.125, %v1437_v36  ;;  %v1423_v9 = vadd.f32 %v1422_v21, %v1421_v60  ;;  %v1443_v52 = vrot.slane %v1442_v27, 1  ;;  %v1211_v38 = vadd.f32 %v3125_v2, %v3025_v31 }
 0x25d   : > { %v1699_v50 = vmax.f32 %v1697_v5, %v1698_v37  ;;  %v1426_v30 = vadd.f32 %v1425_v40, %v1424_v10  ;;  %v1683_v18 = vmax.f32 %v1681_v39, %v1682_v12  ;;  %v1203_v58 = vadd.f32 %v3125_v2, %v3030_v53  ;;  %v3317_v40 = vld [vmem:[#allocation9_spill] sm:$0xff]  ;;  %v3318_v12 = vld [vmem:[#allocation10_spill] sm:$0xff] }
 0x25e   : > { %v1672_v35 = vrot.slane %v1671_v6, 1  ;;  %v1694_v61 = vmax.f32 %v1692_v33, %v1693_v19  ;;  %v1679_v14 = vrot.slane %v1678_v34, 1  ;;  %v1444_v3 = vadd.f32 %v1443_v52, %v1442_v27  ;;  %v3316_v19 = vld [vmem:[#allocation18_spill] sm:$0xff] }
 0x25f   : > { %v1427_v47 = vrot.slane %v1426_v30, 2  ;;  %v1684_v28 = vrot.slane %v1683_v18, 2  ;;  %v1247_v22 = vmul.f32 %v3314_v13, %v1211_v38  ;;  %v1245_v1 = vmul.f32 %v3315_v42, %v1203_v58 }
 0x260   : > { %v3179_v31 = vunpack.c.l.b16 %v1775_v29  ;;  %v1784_v49 = vpack.c.bf16 %v1752_v17, %v1752_v17  ;;  %v1497_v44 = vmul.f32 0.125, %v1416_v16  ;;  %v1756_v48 = vadd.f32 %v1694_v61, %v1500_v32 }
 0x261   : > { %v1498_v55 = vmul.f32 0.125, %v1423_v9  ;;  %v1700_v53 = vrot.slane %v1699_v50, 1  ;;  %v1428_v8 = vadd.f32 %v1427_v47, %v1426_v30  ;;  %v1685_v33 = vmax.f32 %v1683_v18, %v1684_v28 }
 0x262   : > { %v1673_v56 = vmax.f32 %v1671_v6, %v1672_v35  ;;  %v1680_v60 = vmax.f32 %v1678_v34, %v1679_v14  ;;  %v1445_v57 = vsel %vm646_vm1, %v1245_v1, 0.0  ;;  %v1702_v15 = vsel %vm646_vm1, %v1245_v1, -inf }
 0x263   : > { %v1501_v46 = vmul.f32 0.125, %v1444_v3  ;;  %v1429_v23 = vrot.slane %v1428_v8, 1  ;;  %v1686_v5 = vrot.slane %v1685_v33, 1  ;;  %v1459_v63 = vsel %vm646_vm1, %v1247_v22, 0.0 }
 0x264   : > { %v1753_v29 = vadd.f32 %v1673_v56, %v1497_v44  ;;  %v1446_v24 = vrot.slane %v1445_v57, 4  ;;  %v1703_v20 = vrot.slane %v1702_v15, 4  ;;  %v1214_v62 = vadd.f32 %v3125_v2, %v3033_v7 }
 0x265   : > { %v1788_v36 = vpack.c.bf16 %v1756_v48, %v1756_v48  ;;  %v1754_v21 = vadd.f32 %v1680_v60, %v1498_v55  ;;  %v1701_v26 = vmax.f32 %v1699_v50, %v1700_v53  ;;  %v1430_v6 = vadd.f32 %v1429_v23, %v1428_v8 }
 0x266   : > { %v1460_v37 = vrot.slane %v1459_v63, 4  ;;  %v1447_v10 = vadd.f32 %v1446_v24, %v1445_v57  ;;  %v1704_v39 = vmax.f32 %v1702_v15, %v1703_v20  ;;  %v1248_v34 = vmul.f32 %v3316_v19, %v1214_v62 }
 0x267   : > { %v1757_v27 = vadd.f32 %v1701_v26, %v1501_v46  ;;  %v1499_v17 = vmul.f32 0.125, %v1430_v6  ;;  %v1687_v16 = vmax.f32 %v1685_v33, %v1686_v5  ;;  %v1874_v32 = vsel %vm1873_vm4, %v3318_v12, %v3317_v40 }
 0x268   : > { %v1859_v9 = vunpack.c.l.b16 %v1784_v49  ;;  %v1448_v52 = vrot.slane %v1447_v10, 2  ;;  %v1705_v38 = vrot.slane %v1704_v39, 2  ;;  %v1466_v7 = vsel %vm646_vm1, %v1248_v34, 0.0 }
 0x269   : > { %v1785_v30 = vpack.c.bf16 %v1753_v29, %v1753_v29  ;;  %v1786_v50 = vpack.c.bf16 %v1754_v21, %v1754_v21  ;;  %v1755_v18 = vadd.f32 %v1687_v16, %v1499_v17  ;;  %v1467_v58 = vrot.slane %v1466_v7, 4  ;;  %v3321_v16 = vld [vmem:[#allocation15_spill] sm:$0xff] }
 0x26a   : > { %v1461_v35 = vadd.f32 %v1460_v37, %v1459_v63  ;;  %v1449_v61 = vadd.f32 %v1448_v52, %v1447_v10  ;;  %v1706_v14 = vmax.f32 %v1704_v39, %v1705_v38  ;;  %v1876_v3 = vsel %vm1875_vm5, %v3080_v25, %v1874_v32  ;;  %v3319_v25 = vld [vmem:[#allocation16_spill] sm:$0xff] }
 0x26b   : > { %v1863_v47 = vunpack.c.l.b16 %v1788_v36  ;;  %v1789_v28 = vpack.c.bf16 %v1757_v27, %v1757_v27  ;;  %v1787_v13 = vpack.c.bf16 %v1755_v18, %v1755_v18  ;;  %v1716_v42 = vsel %vm646_vm1, %v1247_v22, -inf }
 0x26c   : > { %v1450_v1 = vrot.slane %v1449_v61, 1  ;;  %v1707_v49 = vrot.slane %v1706_v14, 1  ;;  %v1723_v44 = vsel %vm646_vm1, %v1248_v34, -inf  ;;  %v1878_v48 = vsel %vm1877_vm6, %v3091_v54, %v1876_v3  ;;  %v3320_v34 = vld [vmem:[#allocation17_spill] sm:$0xff] }
 0x26d   : > { %v1861_v55 = vunpack.c.l.b16 %v1786_v50  ;;  %v1862_v53 = vunpack.c.l.b16 %v1787_v13  ;;  %v1468_v8 = vadd.f32 %v1467_v58, %v1466_v7  ;;  %v1462_v33 = vrot.slane %v1461_v35, 2 }
 0x26e   : > { %v1717_v56 = vrot.slane %v1716_v42, 4  ;;  %v1451_v60 = vadd.f32 %v1450_v1, %v1449_v61  ;;  %v1880_v57 = vsel %vm1879_vm7, %v3319_v25, %v1878_v48  ;;  %v1864_v15 = vunpack.c.l.b16 %v1789_v28 }
 0x26f   : > { %v1897_v22 = vsel %vm1869_vm2, %v1862_v53, %v1861_v55  ;;  %v1724_v46 = vrot.slane %v1723_v44, 4  ;;  %v1708_v63 = vmax.f32 %v1706_v14, %v1707_v49  ;;  %v1882_v54 = vsel %vm1881_vm8, %v3084_v11, %v1880_v57 }
 0x270   : > { %v1898_v23 = vsel %vm1871_vm3, %v1863_v47, %v1897_v22  ;;  %v1502_v5 = vmul.f32 0.125, %v1451_v60  ;;  %v1860_v29 = vunpack.c.l.b16 %v1785_v30  ;;  %v1469_v20 = vrot.slane %v1468_v8, 2 }
 0x271   : > { %v1899_v24 = vsel %vm1873_vm4, %v1864_v15, %v1898_v23  ;;  %v1885_v62 = vsel %vm1873_vm4, %v3094_v0, %v3071_v4  ;;  %v1718_v36 = vmax.f32 %v1716_v42, %v1717_v56  ;;  %v1895_v6 = vsel %vm1879_vm7, %v1859_v9, %v3168_v41 }
 0x272   : > { %v1758_v21 = vadd.f32 %v1708_v63, %v1502_v5  ;;  %v1886_v26 = vsel %vm1875_vm5, %v3101_v59, %v1885_v62  ;;  %v1852_v11 = vunpack.c.l.b16 %v1777_v51  ;;  %v1725_v37 = vmax.f32 %v1723_v44, %v1724_v46 }
 0x273   : > { %v1887_v10 = vsel %vm1877_vm6, %v3179_v31, %v1886_v26  ;;  %v1896_v39 = vsel %vm1881_vm8, %v1860_v29, %v1895_v6  ;;  %v1463_v19 = vadd.f32 %v1462_v33, %v1461_v35  ;;  %v1206_v59 = vadd.f32 %v3125_v2, %v3320_v34 }
 0x274   : > { %v1790_v4 = vpack.c.bf16 %v1758_v21, %v1758_v21  ;;  %v1888_v0 = vsel %vm1879_vm7, %v3096_v43, %v1887_v10  ;;  %v1470_v27 = vadd.f32 %v1469_v20, %v1468_v8  ;;  %v1719_v17 = vrot.slane %v1718_v36, 2  ;;  %v2165_v20 = vld [vmem:[%s3291_s7] ss:$0 sm:$0xff] }
 0x275   : > { %v1889_v41 = vsel %vm1881_vm8, %v1852_v11, %v1888_v0  ;;  %v1246_v40 = vmul.f32 %v3321_v16, %v1206_v59  ;;  %v1726_v12 = vrot.slane %v1725_v37, 2  ;;  %v1464_v31 = vrot.slane %v1463_v19, 1 }
 0x276   : > { %v1865_v45 = vunpack.c.l.b16 %v1790_v4  ;;  %v1904_v51 = vpack.c.b16 %v1889_v41, %v1882_v54  ;;  %v1471_v52 = vrot.slane %v1470_v27, 1  ;;  %v1720_v7 = vmax.f32 %v1718_v36, %v1719_v17 }
 0x277   : > { %v1452_v9 = vsel %vm646_vm1, %v1246_v40, 0.0  ;;  %v1709_v43 = vsel %vm646_vm1, %v1246_v40, -inf  ;;  %v1727_v30 = vmax.f32 %v1725_v37, %v1726_v12  ;;  %v1465_v58 = vadd.f32 %v1464_v31, %v1463_v19 }
 0x278   : > { %v1900_v32 = vsel %vm1875_vm5, %v1865_v45, %v1899_v24  ;;  %2289 = vmatprep.mubr.msk.bf16.mxu0 %vm646_vm1, %v1904_v51  ;;  %v1453_v2 = vrot.slane %v1452_v9, 4  ;;  %v1710_v38 = vrot.slane %v1709_v43, 4  ;;  %v1472_v35 = vadd.f32 %v1471_v52, %v1470_v27 }
 0x279   : > { %v1721_v3 = vrot.slane %v1720_v7, 1  ;;  %v1728_v47 = vrot.slane %v1727_v30, 1  ;;  %v1504_v42 = vmul.f32 0.125, %v1465_v58 }
 0x27a   : > { %v1454_v50 = vadd.f32 %v1453_v2, %v1452_v9  ;;  %v1711_v18 = vmax.f32 %v1709_v43, %v1710_v38  ;;  %v1505_v1 = vmul.f32 0.125, %v1472_v35 }
 0x27b   : > { %v1722_v48 = vmax.f32 %v1720_v7, %v1721_v3  ;;  %v1729_v55 = vmax.f32 %v1727_v30, %v1728_v47 }
 0x27c   : > { %v1455_v61 = vrot.slane %v1454_v50, 2  ;;  %v1712_v14 = vrot.slane %v1711_v18, 2 }
 0x27d   : > { %v1760_v8 = vadd.f32 %v1722_v48, %v1504_v42  ;;  %v1761_v33 = vadd.f32 %v1729_v55, %v1505_v1 }
 0x27e   : > { %v1456_v28 = vadd.f32 %v1455_v61, %v1454_v50  ;;  %v1713_v13 = vmax.f32 %v1711_v18, %v1712_v14 }
 0x27f   : > { %v1792_v57 = vpack.c.bf16 %v1760_v8, %v1760_v8  ;;  %v1793_v15 = vpack.c.bf16 %v1761_v33, %v1761_v33 }
 0x280   : > { %v1457_v49 = vrot.slane %v1456_v28, 1  ;;  %v1714_v44 = vrot.slane %v1713_v13, 1 }
 0x281   : > { %v1867_v23 = vunpack.c.l.b16 %v1792_v57  ;;  %v1868_v5 = vunpack.c.l.b16 %v1793_v15 }
 0x282   : > { %v1458_v53 = vadd.f32 %v1457_v49, %v1456_v28  ;;  %v1715_v60 = vmax.f32 %v1713_v13, %v1714_v44 }
 0x284   : > { %v1503_v56 = vmul.f32 0.125, %v1458_v53 }
 0x286   : > { %v1759_v25 = vadd.f32 %v1715_v60, %v1503_v56 }
 0x288   : > { %v1791_v22 = vpack.c.bf16 %v1759_v25, %v1759_v25 }
 0x28a   : > { %v1866_v46 = vunpack.c.l.b16 %v1791_v22 }
 0x28c   : > { %v1901_v63 = vsel %vm1877_vm6, %v1866_v46, %v1900_v32 }
 0x28d   : > { %v1902_v54 = vsel %vm1879_vm7, %v1867_v23, %v1901_v63 }
 0x28e   : > { %v1903_v29 = vsel %vm1881_vm8, %v1868_v5, %v1902_v54 }
 0x28f   : > { %v1905_v24 = vpack.c.b16 %v1903_v29, %v1896_v39 }
 0x291   : > { %2290 = vmatmul.mubr.msk.bf16.vlgmr.msra.gmra.mrb[32].mxu0 %vm646_vm1, %v1905_v24 }
 0x364   : > { %v2291_v62 = vpop.f32.mrb[32].mxu0 }
 0x365   : > { %v1958_v36 = vpop.f32.mrb[33].mxu0  ;;  %v1967_v37 = vadd.f32 %v2291_v62, %v2165_v20 }
 0x366   : > { %v1959_v21 = vadd.f32 %v2165_v20, %v1958_v36  ;;  %v2292_v26 = vpop.f32.mrb[34].mxu0 }
 0x367   : > { %v1961_v6 = vpop.f32.mrb[35].mxu0  ;;  %v1970_v10 = vadd.f32 %v2292_v26, %v2165_v20 }
 0x368   : > { %v1962_v11 = vadd.f32 %v2165_v20, %v1961_v6  ;;  %1973 = vmax.xlane.f32.xlu0 %v1959_v21 }
 0x36a   : > { %1975 = vmax.xlane.f32.xlu1 %v1962_v11 }
 0x36c   : > { %1977 = vmax.xlane.f32.xlu0 %v1967_v37 }
 0x36e   : > { %1979 = vmax.xlane.f32.xlu1 %v1970_v10 }
 0x3f5   : > { %v1974_v19 = vpop.xlane.xlu0 %1973 }
 0x3f6   : > { %v1981_v39 = vsub.f32 %v1959_v21, %v1974_v19 }
 0x3f7   : > { %v1976_v4 = vpop.xlane.xlu1 %1975 }
 0x3f8   : > { %v1985_v0 = vmul.f32 1.442695, %v1981_v39  ;;  %v1982_v34 = vsub.f32 %v1962_v11, %v1976_v4 }
 0x3f9   : > { %v1978_v59 = vpop.xlane.xlu0 %1977 }
 0x3fa   : > { %2467 = vpow2.f32 %v1985_v0  ;;  %v1987_v27 = vmul.f32 1.442695, %v1982_v34  ;;  %v1983_v41 = vsub.f32 %v1967_v37, %v1978_v59 }
 0x3fb   : > { %v1980_v17 = vpop.xlane.xlu1 %1979 }
 0x3fc   : > { %2469 = vpow2.f32 %v1987_v27  ;;  %v1989_v45 = vmul.f32 1.442695, %v1983_v41  ;;  %v1984_v51 = vsub.f32 %v1970_v10, %v1980_v17 }
 0x3fe   : > { %2471 = vpow2.f32 %v1989_v45  ;;  %v1991_v16 = vmul.f32 1.442695, %v1984_v51 }
 0x400   : > { %2473 = vpow2.f32 %v1991_v16 }
 0x404   : > { %v2468_v40 = vpop.eup %2467 }
 0x405   : > { %1993 = vadd.xlane.f32.xlu0 %v2468_v40 }
 0x406   : > { %v2470_v12 = vpop.eup %2469 }
 0x407   : > { %1995 = vadd.xlane.f32.xlu1 %v2470_v12 }
 0x408   : > { %v2472_v31 = vpop.eup %2471 }
 0x409   : > { %1997 = vadd.xlane.f32.xlu0 %v2472_v31 }
 0x40a   : > { %v2474_v32 = vpop.eup %2473 }
 0x40b   : > { %1999 = vadd.xlane.f32.xlu1 %v2474_v32 }
 0x492   : > { %v1994_v9 = vpop.xlane.xlu0 %1993 }
 0x493   : > { %2475 = vrcp.f32 %v1994_v9 }
 0x494   : > { %v1996_v43 = vpop.xlane.xlu1 %1995 }
 0x495   : > { %2477 = vrcp.f32 %v1996_v43 }
 0x496   : > { %v1998_v52 = vpop.xlane.xlu0 %1997 }
 0x497   : > { %2479 = vrcp.f32 %v1998_v52 }
 0x498   : > { %v2000_v2 = vpop.xlane.xlu1 %1999 }
 0x499   : > { %2481 = vrcp.f32 %v2000_v2 }
 0x49d   : > { %v2476_v38 = vpop.eup %2475 }
 0x49e   : > { %v2002_v7 = vmul.f32 %v2476_v38, %v2468_v40 }
 0x49f   : > { %v2478_v30 = vpop.eup %2477 }
 0x4a0   : > { %2009 = vst [vmem:[%s300_s13] sm:$0xff] %v2002_v7  ;;  %v2004_v50 = vmul.f32 %v2478_v30, %v2470_v12 }
 0x4a1   : > { %v2480_v18 = vpop.eup %2479 }
 0x4a2   : > { %2010 = vst [vmem:[%s300_s13 + $0x8] sm:$0xff] %v2004_v50  ;;  %v2006_v58 = vmul.f32 %v2480_v18, %v2472_v31 }
 0x4a3   : > { %v2482_v35 = vpop.eup %2481 }
 0x4a4   : > { %2011 = vst [vmem:[%s300_s13 + $0x10] sm:$0xff] %v2006_v58  ;;  %v2008_v61 = vmul.f32 %v2482_v35, %v2474_v32 }
 0x4a6   : > { %2012 = vst [vmem:[%s300_s13 + $0x18] sm:$0xff] %v2008_v61 }
 0x4a7   : > { %2497 = shalt.err (!%p2494_p3)
}
 0x4a8   : > { %s2498_s26 = scalar_lea.hbm %s3239_s21, 512  ;;  %s2502_s11 = scalar_lea.hbm %s3292_s8, 2048 }
 0x4a9   : > { %p2499_p4 = scmp.ne.s32.totalorder %s3239_s21, %s2498_s26  ;;  %p2503_p9 = scmp.lt.u32.totalorder %s3239_s21, %s3292_s8 }
 0x4aa   : > { %p2504_p10 = scmp.lt.u32.totalorder %s2502_s11, %s2498_s26  ;;  %p2506_p12 = scmp.lt.u32.totalorder %s2498_s26, %s3239_s21 }
 0x4ab   : > { %p2500_p7 = pnand %p2499_p4, %p2637_p5 }
 0x4ac   : > { %p2505_p11 = por %p2504_p10, %p2503_p9 }
 0x4ad   : > { %p2501_p8 = pneg %p2500_p7 }
 0x4ae   : > { %p2507_p13 = por %p2506_p12, %p2505_p11 }
 0x4b0   : > { %p2508_p0 = pnand %p2507_p13, %p2501_p8 }
 0x4b2   : > { %2511 = shalt.err (!%p2508_p0)
}
 0x4b3   : > { %s2549_s19 = smov 128   ;;  %s2550_s20 = smov 8  }
 0x4b4   : > { %2293 = dma.vmem_to_hbm [thread:$0]  (%p2637_p5), %s3241_s18, 512, %s3239_s21, %s3243_s22, %s2549_s19, %s2549_s19, %s2550_s20  }
 0x4b5 PF: > { %p2299_p1 = scmp.ge.s32.totalorder %s2546_s10, 2  ;;  %s2042_s3 = sand.u32 1, %s2534_s29  }
 0x4b6   : > { %s2043_s23 = scalar_lea.sflag [#allocation4], %s2042_s3 }
 0x4b7   : > { %p2296_p2 = pnand %p2299_p1, %p2641_p6 }
 0x4b9   : > { %2529 = dma.done.wait (!%p2296_p2), %s2043_s23, 512  }
 0x4ba   : > { %2531 = vsyncadd (!%p2296_p2), %s2043_s23, 4294966784  ;;  %p19_p3 = scmp.ge.s32.totalorder %s2624_s12, 6   ;;  %s3322_s29 = smov %s2538_s30 }
 0x4bb   : > { %s3323_s30 = smov %s2542_s9  ;;  %s3324_s9 = smov %s2635_s15 }
 0x4bc   : > { %s3325_s10 = smov %s2624_s12  ;;  %21 = sbr.rel (!%p19_p3) target bundleno = 5 (0x5), region = 87 }
 0x4c3   :  { %2048 = vsyncpa [#allocation4], 1 }
 0x4c4   :  { %2050 = vsyncpa [#allocation4 + $0x1], 1 }

</bundles_post_ra>
